<compile_context>
chip_gen: v7x
topology: tpu7x:2x2x1
jax: 0.10.0
libtpu: 0.0.40
codegen_flags: <defaults>
</compile_context>

<pallas_src>
import math
from functools import partial

import jax
import jax.numpy as jnp
from jax import lax
from jax.experimental import pallas as pl
from jax.experimental.pallas import tpu as pltpu


# ----------------------------------------------------------------------------
# Fused encoder-layer kernel (one batch element per grid step)
# ----------------------------------------------------------------------------
def _encoder_layer_kernel(
    x_ref, pos_ref,
    wqk_ref, bqk_ref, wv_ref, bv_ref, wo_ref, bo_ref,
    g1_ref, be1_ref,
    w1_ref, bb1_ref, w2_ref, bb2_ref,
    g2_ref, be2_ref,
    out_ref,
    *, num_heads, head_dim, eps,
):
    f32 = jnp.float32
    bf16 = jnp.bfloat16

    x = x_ref[0]            # (S, D) f32, src
    p = pos_ref[0]          # (S, D) f32, positional embedding
    S, D = x.shape

    # q = k = src + pos ; v = src   (DETR with_pos_embed convention)
    xq = (x + p).astype(bf16)
    xv = x.astype(bf16)

    # Fused Q/K projection: (S, D) @ (D, 2D) bf16; V projection uses src (no pos).
    # Weights arrive pre-cast to bf16; 1/sqrt(head_dim) already folded into wqk/bqk.
    qk = jnp.dot(xq, wqk_ref[...], preferred_element_type=f32) + bqk_ref[...]
    v = jnp.dot(xv, wv_ref[...], preferred_element_type=f32) + bv_ref[...]

    q = qk[:, :D].astype(bf16)
    k = qk[:, D:].astype(bf16)
    vb = v.astype(bf16)

    # Per-head attention; probs stay in registers/VMEM, never written to HBM.
    # bf16 operands on both attention matmuls, f32 accumulation.
    heads = []
    for h in range(num_heads):
        sl = slice(h * head_dim, (h + 1) * head_dim)
        qh = q[:, sl]                               # (S, hd) bf16 (already scaled)
        kh = k[:, sl]                               # (S, hd) bf16
        vh = vb[:, sl]                              # (S, hd) bf16
        # scores = qh @ kh.T, contracted on head_dim (no explicit transpose).
        s = lax.dot_general(qh, kh, (((1,), (1,)), ((), ())),
                            preferred_element_type=f32)      # (S, S) f32
        s = s - jnp.max(s, axis=-1, keepdims=True)
        e = jnp.exp(s)
        inv = pl.reciprocal(jnp.sum(e, axis=-1, keepdims=True), approx=True)
        pr = (e * inv).astype(bf16)                           # (S, S) bf16
        att_h = jnp.dot(pr, vh, preferred_element_type=f32)   # (S, hd) f32
        heads.append(att_h.astype(bf16))

    # Concatenate heads back to a lane-dense (S, D) slab, then ONE output
    # projection matmul (K = D) instead of per-head K = head_dim matmuls.
    att = jnp.concatenate(heads, axis=-1)                     # (S, D) bf16
    proj = jnp.dot(att, wo_ref[...], preferred_element_type=f32) + bo_ref[...]

    # residual + LayerNorm 1  (post-norm), f32 math
    y = x + proj
    mu = jnp.mean(y, axis=-1, keepdims=True)
    var = jnp.mean((y - mu) ** 2, axis=-1, keepdims=True)
    y = (y - mu) * lax.rsqrt(var + eps) * g1_ref[...] + be1_ref[...]

    # FFN: linear1 -> relu -> linear2   (hidden (S, FF) stays in VMEM)
    hdn = jnp.dot(y.astype(bf16), w1_ref[...], preferred_element_type=f32) + bb1_ref[...]
    hdn = jnp.maximum(hdn, 0.0)
    ff = jnp.dot(hdn.astype(bf16), w2_ref[...], preferred_element_type=f32) + bb2_ref[...]

    # residual + LayerNorm 2
    z = y + ff
    mu2 = jnp.mean(z, axis=-1, keepdims=True)
    var2 = jnp.mean((z - mu2) ** 2, axis=-1, keepdims=True)
    out_ref[0] = ((z - mu2) * lax.rsqrt(var2 + eps) * g2_ref[...]
                  + be2_ref[...]).astype(out_ref.dtype)


# ----------------------------------------------------------------------------
# One-time parameter prep: fold 1/sqrt(head_dim) into Q projection, cast the
# big weight matrices to bf16 (biases / LayerNorm params stay f32).
# ----------------------------------------------------------------------------
def prepare_layer_params(params, num_heads):
    D = params["wv"].shape[0]
    assert D % num_heads == 0, "d_model must be divisible by n_heads"
    hd = D // num_heads
    scale = 1.0 / math.sqrt(hd)

    wqk = params["wqk"].at[:, :D].multiply(scale)
    bqk = params["bqk"].at[:D].multiply(scale)

    bf16 = jnp.bfloat16
    f32 = jnp.float32
    return {
        "wqk": wqk.astype(bf16), "bqk": bqk.astype(f32),
        "wv": params["wv"].astype(bf16), "bv": params["bv"].astype(f32),
        "wo": params["wo"].astype(bf16), "bo": params["bo"].astype(f32),
        "norm1_g": params["norm1_g"].astype(f32), "norm1_b": params["norm1_b"].astype(f32),
        "w1": params["w1"].astype(bf16), "b1": params["b1"].astype(f32),
        "w2": params["w2"].astype(bf16), "b2": params["b2"].astype(f32),
        "norm2_g": params["norm2_g"].astype(f32), "norm2_b": params["norm2_b"].astype(f32),
    }


def _estimate_vmem_bytes(S, D, FF):
    # bf16 weights (single-buffered) + f32 activations/intermediates, rough upper bound.
    weights = 2 * (2 * D * D + D * D + D * D + D * FF + FF * D)
    acts = 2 * 2 * (S * D * 4) + 2 * (S * D * 4)          # x, pos (dbl-buf) + out
    inter = (S * 3 * D) * 4 + 2 * (S * S * 4) + S * FF * 6 + 4 * S * D * 4
    return weights + acts + inter


# ----------------------------------------------------------------------------
# Wrapper (matches TransformerEncoderLayer.forward_post semantics, no masks)
# ----------------------------------------------------------------------------
def transformer_encoder_layer_fwd(params, src, src_pos_embed=None, src_shape=None,
                                  *, num_heads, eps=1e-5, batch_first=False,
                                  out_dtype=jnp.float32):
    """params must come from prepare_layer_params().
    src: (S, B, D) sequence-first (like the PyTorch module) unless batch_first=True,
    in which case it is (B, S, D) and the wrapper transposes are skipped."""
    if batch_first:
        B, S, D = src.shape
    else:
        S, B, D = src.shape
    hd = D // num_heads
    FF = params["w1"].shape[1]

    # Lane-dense layout requirements (real DETR: D=256, FF=2048 satisfy these).
    assert D % 128 == 0, "d_model must be a multiple of 128 (lane-dense vregs)"
    assert FF % 128 == 0, "dim_feedforward must be a multiple of 128"
    assert D % num_heads == 0 and hd % 8 == 0, "head_dim must be a multiple of 8"
    assert S % 8 == 0, "sequence length must be a multiple of 8 (sublane-aligned)"

    if src_pos_embed is None:
        src_pos_embed = jnp.zeros_like(src)

    if batch_first:
        x, pos = src, src_pos_embed
    else:
        # Batch-first so each grid step sees a full lane-dense (S, D) slab.
        x = jnp.transpose(src, (1, 0, 2))              # (B, S, D)
        pos = jnp.transpose(src_pos_embed, (1, 0, 2))  # (B, S, D)

    row = lambda v: v.reshape(1, -1)

    def bsd_spec():
        return pl.BlockSpec((1, S, D), lambda b: (b, 0, 0))

    def const_spec(shape):
        # Constant operands: fetched once, single-buffered (no wasted VMEM).
        return pl.BlockSpec(shape, lambda b: (0,) * len(shape),
                            pipeline_mode=pl.Buffered(1))

    vmem_limit = int(min(max(32 * 1024 * 1024, 2 * _estimate_vmem_bytes(S, D, FF)),
                         64 * 1024 * 1024))

    out = pl.pallas_call(
        partial(_encoder_layer_kernel, num_heads=num_heads, head_dim=hd, eps=eps),
        out_shape=jax.ShapeDtypeStruct((B, S, D), out_dtype),
        grid=(B,),
        in_specs=[
            bsd_spec(), bsd_spec(),                            # src, pos
            const_spec((D, 2 * D)), const_spec((1, 2 * D)),    # wqk (bf16), bqk
            const_spec((D, D)), const_spec((1, D)),            # wv (bf16), bv
            const_spec((D, D)), const_spec((1, D)),            # wo (bf16), bo
            const_spec((1, D)), const_spec((1, D)),            # norm1 gamma, beta
            const_spec((D, FF)), const_spec((1, FF)),          # w1 (bf16), b1
            const_spec((FF, D)), const_spec((1, D)),           # w2 (bf16), b2
            const_spec((1, D)), const_spec((1, D)),            # norm2 gamma, beta
        ],
        out_specs=bsd_spec(),
        compiler_params=pltpu.CompilerParams(
            dimension_semantics=("parallel",),                 # split batch over TCs
            vmem_limit_bytes=vmem_limit),
    )(x, pos,
      params["wqk"], row(params["bqk"]),
      params["wv"], row(params["bv"]),
      params["wo"], row(params["bo"]),
      row(params["norm1_g"]), row(params["norm1_b"]),
      params["w1"], row(params["b1"]),
      params["w2"], row(params["b2"]),
      row(params["norm2_g"]), row(params["norm2_b"]))

    if batch_first:
        return out
    return jnp.transpose(out, (1, 0, 2))                       # back to (S, B, D)


# ----------------------------------------------------------------------------
# Deterministic parameter init (f32 "torch-like" params; prep casts/folds)
# ----------------------------------------------------------------------------
def init_params(key, D, FF):
    def dense(k, fan_in, shape):
        return jax.random.normal(k, shape, jnp.float32) * (1.0 / math.sqrt(fan_in))

    ks = jax.random.split(key, 5)
    return {
        # Q and K projections fused column-wise: x @ wqk -> [q | k]
        "wqk": dense(ks[0], D, (D, 2 * D)), "bqk": jnp.zeros((2 * D,), jnp.float32),
        "wv": dense(ks[1], D, (D, D)), "bv": jnp.zeros((D,), jnp.float32),
        "wo": dense(ks[2], D, (D, D)), "bo": jnp.zeros((D,), jnp.float32),
        "norm1_g": jnp.ones((D,), jnp.float32), "norm1_b": jnp.zeros((D,), jnp.float32),
        "w1": dense(ks[3], D, (D, FF)), "b1": jnp.zeros((FF,), jnp.float32),
        "w2": dense(ks[4], FF, (FF, D)), "b2": jnp.zeros((D,), jnp.float32),
        "norm2_g": jnp.ones((D,), jnp.float32), "norm2_b": jnp.zeros((D,), jnp.float32),
    }


# ----------------------------------------------------------------------------
# Main
# ----------------------------------------------------------------------------
if __name__ == "__main__":
    H_SP, W_SP = 4, 4           # spatial feature-map shape (src_shape)
    S = H_SP * W_SP             # 16 flattened tokens
    B = 2                       # batch
    D = 128                     # d_model (lane-dense)
    NH = 4                      # n_heads  -> head_dim = 32
    FF = 256                    # dim_feedforward (lane-dense)

    key = jax.random.PRNGKey(0)
    k_src, k_pos, k_par = jax.random.split(key, 3)

    src = jax.random.normal(k_src, (S, B, D), jnp.float32)
    src_pos_embed = jax.random.normal(k_pos, (S, B, D), jnp.float32)
    params = prepare_layer_params(init_params(k_par, D, FF), NH)

    fwd = jax.jit(partial(transformer_encoder_layer_fwd, num_heads=NH))
    out = fwd(params, src, src_pos_embed, (H_SP, W_SP))
    jax.block_until_ready(out)

    assert out.shape == (S, B, D)
    assert bool(jnp.all(jnp.isfinite(out)))
    print("KERNEL_OK")
</pallas_src>

<mosaic_0001>
module attributes {stable_mosaic.version = 11 : i64} {
  func.func @_encoder_layer_kernel(%arg0: i32, %arg1: memref<1x16x128xf32, #tpu.memory_space<vmem>>, %arg2: memref<1x16x128xf32, #tpu.memory_space<vmem>>, %arg3: memref<128x256xbf16, #tpu.memory_space<vmem>>, %arg4: memref<1x256xf32, #tpu.memory_space<vmem>>, %arg5: memref<128x128xbf16, #tpu.memory_space<vmem>>, %arg6: memref<1x128xf32, #tpu.memory_space<vmem>>, %arg7: memref<128x128xbf16, #tpu.memory_space<vmem>>, %arg8: memref<1x128xf32, #tpu.memory_space<vmem>>, %arg9: memref<1x128xf32, #tpu.memory_space<vmem>>, %arg10: memref<1x128xf32, #tpu.memory_space<vmem>>, %arg11: memref<128x256xbf16, #tpu.memory_space<vmem>>, %arg12: memref<1x256xf32, #tpu.memory_space<vmem>>, %arg13: memref<256x128xbf16, #tpu.memory_space<vmem>>, %arg14: memref<1x128xf32, #tpu.memory_space<vmem>>, %arg15: memref<1x128xf32, #tpu.memory_space<vmem>>, %arg16: memref<1x128xf32, #tpu.memory_space<vmem>>, %arg17: memref<1x16x128xf32, #tpu.memory_space<vmem>>) attributes {dimension_semantics = [#tpu.dimension_semantics<parallel>], iteration_bounds = array<i64: 2>, scalar_prefetch = 0 : i64, scratch_operands = 0 : i64, tpu.core_type = #tpu.core_type<tc>, window_params = [{transform_indices = @transform_0, window_bounds = array<i64: 1, 16, 128>}, {transform_indices = @transform_1, window_bounds = array<i64: 1, 16, 128>}, {pipeline_mode = #tpu.pipeline_mode<synchronous>, transform_indices = @transform_2, window_bounds = array<i64: 128, 256>}, {pipeline_mode = #tpu.pipeline_mode<synchronous>, transform_indices = @transform_3, window_bounds = array<i64: 1, 256>}, {pipeline_mode = #tpu.pipeline_mode<synchronous>, transform_indices = @transform_4, window_bounds = array<i64: 128, 128>}, {pipeline_mode = #tpu.pipeline_mode<synchronous>, transform_indices = @transform_5, window_bounds = array<i64: 1, 128>}, {pipeline_mode = #tpu.pipeline_mode<synchronous>, transform_indices = @transform_6, window_bounds = array<i64: 128, 128>}, {pipeline_mode = #tpu.pipeline_mode<synchronous>, transform_indices = @transform_7, window_bounds = array<i64: 1, 128>}, {pipeline_mode = #tpu.pipeline_mode<synchronous>, transform_indices = @transform_8, window_bounds = array<i64: 1, 128>}, {pipeline_mode = #tpu.pipeline_mode<synchronous>, transform_indices = @transform_9, window_bounds = array<i64: 1, 128>}, {pipeline_mode = #tpu.pipeline_mode<synchronous>, transform_indices = @transform_10, window_bounds = array<i64: 128, 256>}, {pipeline_mode = #tpu.pipeline_mode<synchronous>, transform_indices = @transform_11, window_bounds = array<i64: 1, 256>}, {pipeline_mode = #tpu.pipeline_mode<synchronous>, transform_indices = @transform_12, window_bounds = array<i64: 256, 128>}, {pipeline_mode = #tpu.pipeline_mode<synchronous>, transform_indices = @transform_13, window_bounds = array<i64: 1, 128>}, {pipeline_mode = #tpu.pipeline_mode<synchronous>, transform_indices = @transform_14, window_bounds = array<i64: 1, 128>}, {pipeline_mode = #tpu.pipeline_mode<synchronous>, transform_indices = @transform_15, window_bounds = array<i64: 1, 128>}, {transform_indices = @transform_16, window_bounds = array<i64: 1, 16, 128>}]} {
    %c0 = arith.constant 0 : index
    %c0_0 = arith.constant 0 : index
    %c0_1 = arith.constant 0 : index
    %0 = vector.load %arg1[%c0, %c0_0, %c0_1] : memref<1x16x128xf32, #tpu.memory_space<vmem>>, vector<1x16x128xf32>
    %1 = vector.shape_cast %0 : vector<1x16x128xf32> to vector<16x128xf32>
    %c0_2 = arith.constant 0 : index
    %c0_3 = arith.constant 0 : index
    %c0_4 = arith.constant 0 : index
    %2 = vector.load %arg2[%c0_2, %c0_3, %c0_4] : memref<1x16x128xf32, #tpu.memory_space<vmem>>, vector<1x16x128xf32>
    %3 = vector.shape_cast %2 : vector<1x16x128xf32> to vector<16x128xf32>
    %4 = arith.addf %1, %3 : vector<16x128xf32>
    %5 = arith.truncf %4 : vector<16x128xf32> to vector<16x128xbf16>
    %6 = arith.truncf %1 : vector<16x128xf32> to vector<16x128xbf16>
    %c0_5 = arith.constant 0 : index
    %c0_6 = arith.constant 0 : index
    %7 = vector.load %arg3[%c0_5, %c0_6] : memref<128x256xbf16, #tpu.memory_space<vmem>>, vector<128x256xbf16>
    %cst = arith.constant dense<0.000000e+00> : vector<16x256xf32>
    %8 = tpu.matmul %5, %7, %cst {dimension_numbers = #tpu.dot_dimension_numbers<[1], [0], [0], [1], [0, 0, 1, 1], [], []>} : vector<16x128xbf16>, vector<128x256xbf16>, vector<16x256xf32> -> vector<16x256xf32>
    %c0_7 = arith.constant 0 : index
    %c0_8 = arith.constant 0 : index
    %9 = vector.load %arg4[%c0_7, %c0_8] : memref<1x256xf32, #tpu.memory_space<vmem>>, vector<1x256xf32>
    %10 = vector.broadcast %9 : vector<1x256xf32> to vector<16x256xf32>
    %11 = arith.addf %8, %10 : vector<16x256xf32>
    %c0_9 = arith.constant 0 : index
    %c0_10 = arith.constant 0 : index
    %12 = vector.load %arg5[%c0_9, %c0_10] : memref<128x128xbf16, #tpu.memory_space<vmem>>, vector<128x128xbf16>
    %cst_11 = arith.constant dense<0.000000e+00> : vector<16x128xf32>
    %13 = tpu.matmul %6, %12, %cst_11 {dimension_numbers = #tpu.dot_dimension_numbers<[1], [0], [0], [1], [0, 0, 1, 1], [], []>} : vector<16x128xbf16>, vector<128x128xbf16>, vector<16x128xf32> -> vector<16x128xf32>
    %c0_12 = arith.constant 0 : index
    %c0_13 = arith.constant 0 : index
    %14 = vector.load %arg6[%c0_12, %c0_13] : memref<1x128xf32, #tpu.memory_space<vmem>>, vector<1x128xf32>
    %15 = vector.broadcast %14 : vector<1x128xf32> to vector<16x128xf32>
    %16 = arith.addf %13, %15 : vector<16x128xf32>
    %17 = vector.extract_strided_slice %11 {offsets = [0, 0], sizes = [16, 128], strides = [1, 1]} : vector<16x256xf32> to vector<16x128xf32>
    %18 = arith.truncf %17 : vector<16x128xf32> to vector<16x128xbf16>
    %19 = vector.extract_strided_slice %11 {offsets = [0, 128], sizes = [16, 128], strides = [1, 1]} : vector<16x256xf32> to vector<16x128xf32>
    %20 = arith.truncf %19 : vector<16x128xf32> to vector<16x128xbf16>
    %21 = arith.truncf %16 : vector<16x128xf32> to vector<16x128xbf16>
    %22 = vector.extract_strided_slice %18 {offsets = [0, 0], sizes = [16, 32], strides = [1, 1]} : vector<16x128xbf16> to vector<16x32xbf16>
    %23 = vector.extract_strided_slice %20 {offsets = [0, 0], sizes = [16, 32], strides = [1, 1]} : vector<16x128xbf16> to vector<16x32xbf16>
    %24 = vector.extract_strided_slice %21 {offsets = [0, 0], sizes = [16, 32], strides = [1, 1]} : vector<16x128xbf16> to vector<16x32xbf16>
    %cst_14 = arith.constant dense<0.000000e+00> : vector<16x16xf32>
    %25 = tpu.matmul %22, %23, %cst_14 {dimension_numbers = #tpu.dot_dimension_numbers<[1], [1], [0], [0], [0, 0, 1, 0], [], []>} : vector<16x32xbf16>, vector<16x32xbf16>, vector<16x16xf32> -> vector<16x16xf32>
    %cst_15 = arith.constant dense<0xFF800000> : vector<16xf32>
    %26 = vector.multi_reduction <maximumf>, %25, %cst_15 [1] : vector<16x16xf32> to vector<16xf32>
    %27 = vector.shape_cast %26 : vector<16xf32> to vector<16x1xf32>
    %28 = vector.broadcast %27 : vector<16x1xf32> to vector<16x16xf32>
    %29 = arith.subf %25, %28 : vector<16x16xf32>
    %30 = math.exp %29 : vector<16x16xf32>
    %cst_16 = arith.constant dense<0.000000e+00> : vector<16xf32>
    %31 = vector.multi_reduction <add>, %30, %cst_16 [1] : vector<16x16xf32> to vector<16xf32>
    %32 = vector.shape_cast %31 : vector<16xf32> to vector<16x1xf32>
    %33 = tpu.reciprocal %32 {approx = true} : vector<16x1xf32> -> vector<16x1xf32>
    %34 = vector.broadcast %33 : vector<16x1xf32> to vector<16x16xf32>
    %35 = arith.mulf %30, %34 : vector<16x16xf32>
    %36 = arith.truncf %35 : vector<16x16xf32> to vector<16x16xbf16>
    %cst_17 = arith.constant dense<0.000000e+00> : vector<16x32xf32>
    %37 = tpu.matmul %36, %24, %cst_17 {dimension_numbers = #tpu.dot_dimension_numbers<[1], [0], [0], [1], [0, 0, 1, 1], [], []>} : vector<16x16xbf16>, vector<16x32xbf16>, vector<16x32xf32> -> vector<16x32xf32>
    %38 = arith.truncf %37 : vector<16x32xf32> to vector<16x32xbf16>
    %39 = vector.extract_strided_slice %18 {offsets = [0, 32], sizes = [16, 32], strides = [1, 1]} : vector<16x128xbf16> to vector<16x32xbf16>
    %40 = vector.extract_strided_slice %20 {offsets = [0, 32], sizes = [16, 32], strides = [1, 1]} : vector<16x128xbf16> to vector<16x32xbf16>
    %41 = vector.extract_strided_slice %21 {offsets = [0, 32], sizes = [16, 32], strides = [1, 1]} : vector<16x128xbf16> to vector<16x32xbf16>
    %cst_18 = arith.constant dense<0.000000e+00> : vector<16x16xf32>
    %42 = tpu.matmul %39, %40, %cst_18 {dimension_numbers = #tpu.dot_dimension_numbers<[1], [1], [0], [0], [0, 0, 1, 0], [], []>} : vector<16x32xbf16>, vector<16x32xbf16>, vector<16x16xf32> -> vector<16x16xf32>
    %cst_19 = arith.constant dense<0xFF800000> : vector<16xf32>
    %43 = vector.multi_reduction <maximumf>, %42, %cst_19 [1] : vector<16x16xf32> to vector<16xf32>
    %44 = vector.shape_cast %43 : vector<16xf32> to vector<16x1xf32>
    %45 = vector.broadcast %44 : vector<16x1xf32> to vector<16x16xf32>
    %46 = arith.subf %42, %45 : vector<16x16xf32>
    %47 = math.exp %46 : vector<16x16xf32>
    %cst_20 = arith.constant dense<0.000000e+00> : vector<16xf32>
    %48 = vector.multi_reduction <add>, %47, %cst_20 [1] : vector<16x16xf32> to vector<16xf32>
    %49 = vector.shape_cast %48 : vector<16xf32> to vector<16x1xf32>
    %50 = tpu.reciprocal %49 {approx = true} : vector<16x1xf32> -> vector<16x1xf32>
    %51 = vector.broadcast %50 : vector<16x1xf32> to vector<16x16xf32>
    %52 = arith.mulf %47, %51 : vector<16x16xf32>
    %53 = arith.truncf %52 : vector<16x16xf32> to vector<16x16xbf16>
    %cst_21 = arith.constant dense<0.000000e+00> : vector<16x32xf32>
    %54 = tpu.matmul %53, %41, %cst_21 {dimension_numbers = #tpu.dot_dimension_numbers<[1], [0], [0], [1], [0, 0, 1, 1], [], []>} : vector<16x16xbf16>, vector<16x32xbf16>, vector<16x32xf32> -> vector<16x32xf32>
    %55 = arith.truncf %54 : vector<16x32xf32> to vector<16x32xbf16>
    %56 = vector.extract_strided_slice %18 {offsets = [0, 64], sizes = [16, 32], strides = [1, 1]} : vector<16x128xbf16> to vector<16x32xbf16>
    %57 = vector.extract_strided_slice %20 {offsets = [0, 64], sizes = [16, 32], strides = [1, 1]} : vector<16x128xbf16> to vector<16x32xbf16>
    %58 = vector.extract_strided_slice %21 {offsets = [0, 64], sizes = [16, 32], strides = [1, 1]} : vector<16x128xbf16> to vector<16x32xbf16>
    %cst_22 = arith.constant dense<0.000000e+00> : vector<16x16xf32>
    %59 = tpu.matmul %56, %57, %cst_22 {dimension_numbers = #tpu.dot_dimension_numbers<[1], [1], [0], [0], [0, 0, 1, 0], [], []>} : vector<16x32xbf16>, vector<16x32xbf16>, vector<16x16xf32> -> vector<16x16xf32>
    %cst_23 = arith.constant dense<0xFF800000> : vector<16xf32>
    %60 = vector.multi_reduction <maximumf>, %59, %cst_23 [1] : vector<16x16xf32> to vector<16xf32>
    %61 = vector.shape_cast %60 : vector<16xf32> to vector<16x1xf32>
    %62 = vector.broadcast %61 : vector<16x1xf32> to vector<16x16xf32>
    %63 = arith.subf %59, %62 : vector<16x16xf32>
    %64 = math.exp %63 : vector<16x16xf32>
    %cst_24 = arith.constant dense<0.000000e+00> : vector<16xf32>
    %65 = vector.multi_reduction <add>, %64, %cst_24 [1] : vector<16x16xf32> to vector<16xf32>
    %66 = vector.shape_cast %65 : vector<16xf32> to vector<16x1xf32>
    %67 = tpu.reciprocal %66 {approx = true} : vector<16x1xf32> -> vector<16x1xf32>
    %68 = vector.broadcast %67 : vector<16x1xf32> to vector<16x16xf32>
    %69 = arith.mulf %64, %68 : vector<16x16xf32>
    %70 = arith.truncf %69 : vector<16x16xf32> to vector<16x16xbf16>
    %cst_25 = arith.constant dense<0.000000e+00> : vector<16x32xf32>
    %71 = tpu.matmul %70, %58, %cst_25 {dimension_numbers = #tpu.dot_dimension_numbers<[1], [0], [0], [1], [0, 0, 1, 1], [], []>} : vector<16x16xbf16>, vector<16x32xbf16>, vector<16x32xf32> -> vector<16x32xf32>
    %72 = arith.truncf %71 : vector<16x32xf32> to vector<16x32xbf16>
    %73 = vector.extract_strided_slice %18 {offsets = [0, 96], sizes = [16, 32], strides = [1, 1]} : vector<16x128xbf16> to vector<16x32xbf16>
    %74 = vector.extract_strided_slice %20 {offsets = [0, 96], sizes = [16, 32], strides = [1, 1]} : vector<16x128xbf16> to vector<16x32xbf16>
    %75 = vector.extract_strided_slice %21 {offsets = [0, 96], sizes = [16, 32], strides = [1, 1]} : vector<16x128xbf16> to vector<16x32xbf16>
    %cst_26 = arith.constant dense<0.000000e+00> : vector<16x16xf32>
    %76 = tpu.matmul %73, %74, %cst_26 {dimension_numbers = #tpu.dot_dimension_numbers<[1], [1], [0], [0], [0, 0, 1, 0], [], []>} : vector<16x32xbf16>, vector<16x32xbf16>, vector<16x16xf32> -> vector<16x16xf32>
    %cst_27 = arith.constant dense<0xFF800000> : vector<16xf32>
    %77 = vector.multi_reduction <maximumf>, %76, %cst_27 [1] : vector<16x16xf32> to vector<16xf32>
    %78 = vector.shape_cast %77 : vector<16xf32> to vector<16x1xf32>
    %79 = vector.broadcast %78 : vector<16x1xf32> to vector<16x16xf32>
    %80 = arith.subf %76, %79 : vector<16x16xf32>
    %81 = math.exp %80 : vector<16x16xf32>
    %cst_28 = arith.constant dense<0.000000e+00> : vector<16xf32>
    %82 = vector.multi_reduction <add>, %81, %cst_28 [1] : vector<16x16xf32> to vector<16xf32>
    %83 = vector.shape_cast %82 : vector<16xf32> to vector<16x1xf32>
    %84 = tpu.reciprocal %83 {approx = true} : vector<16x1xf32> -> vector<16x1xf32>
    %85 = vector.broadcast %84 : vector<16x1xf32> to vector<16x16xf32>
    %86 = arith.mulf %81, %85 : vector<16x16xf32>
    %87 = arith.truncf %86 : vector<16x16xf32> to vector<16x16xbf16>
    %cst_29 = arith.constant dense<0.000000e+00> : vector<16x32xf32>
    %88 = tpu.matmul %87, %75, %cst_29 {dimension_numbers = #tpu.dot_dimension_numbers<[1], [0], [0], [1], [0, 0, 1, 1], [], []>} : vector<16x16xbf16>, vector<16x32xbf16>, vector<16x32xf32> -> vector<16x32xf32>
    %89 = arith.truncf %88 : vector<16x32xf32> to vector<16x32xbf16>
    %90 = tpu.concatenate %38, %55, %72, %89 in 1 : vector<16x32xbf16>, vector<16x32xbf16>, vector<16x32xbf16>, vector<16x32xbf16> -> vector<16x128xbf16>
    %c0_30 = arith.constant 0 : index
    %c0_31 = arith.constant 0 : index
    %91 = vector.load %arg7[%c0_30, %c0_31] : memref<128x128xbf16, #tpu.memory_space<vmem>>, vector<128x128xbf16>
    %cst_32 = arith.constant dense<0.000000e+00> : vector<16x128xf32>
    %92 = tpu.matmul %90, %91, %cst_32 {dimension_numbers = #tpu.dot_dimension_numbers<[1], [0], [0], [1], [0, 0, 1, 1], [], []>} : vector<16x128xbf16>, vector<128x128xbf16>, vector<16x128xf32> -> vector<16x128xf32>
    %c0_33 = arith.constant 0 : index
    %c0_34 = arith.constant 0 : index
    %93 = vector.load %arg8[%c0_33, %c0_34] : memref<1x128xf32, #tpu.memory_space<vmem>>, vector<1x128xf32>
    %94 = vector.broadcast %93 : vector<1x128xf32> to vector<16x128xf32>
    %95 = arith.addf %92, %94 : vector<16x128xf32>
    %96 = arith.addf %1, %95 : vector<16x128xf32>
    %cst_35 = arith.constant dense<0.000000e+00> : vector<16xf32>
    %97 = vector.multi_reduction <add>, %96, %cst_35 [1] : vector<16x128xf32> to vector<16xf32>
    %98 = vector.shape_cast %97 : vector<16xf32> to vector<16x1xf32>
    %cst_36 = arith.constant 1.280000e+02 : f32
    %99 = vector.broadcast %cst_36 : f32 to vector<16x1xf32>
    %100 = arith.divf %98, %99 : vector<16x1xf32>
    %101 = vector.broadcast %100 : vector<16x1xf32> to vector<16x128xf32>
    %102 = arith.subf %96, %101 : vector<16x128xf32>
    %103 = arith.mulf %102, %102 : vector<16x128xf32>
    %cst_37 = arith.constant dense<0.000000e+00> : vector<16xf32>
    %104 = vector.multi_reduction <add>, %103, %cst_37 [1] : vector<16x128xf32> to vector<16xf32>
    %105 = vector.shape_cast %104 : vector<16xf32> to vector<16x1xf32>
    %cst_38 = arith.constant 1.280000e+02 : f32
    %106 = vector.broadcast %cst_38 : f32 to vector<16x1xf32>
    %107 = arith.divf %105, %106 : vector<16x1xf32>
    %108 = vector.broadcast %100 : vector<16x1xf32> to vector<16x128xf32>
    %109 = arith.subf %96, %108 : vector<16x128xf32>
    %cst_39 = arith.constant 9.99999974E-6 : f32
    %110 = vector.broadcast %cst_39 : f32 to vector<16x1xf32>
    %111 = arith.addf %107, %110 : vector<16x1xf32>
    %112 = math.rsqrt %111 : vector<16x1xf32>
    %113 = vector.broadcast %112 : vector<16x1xf32> to vector<16x128xf32>
    %114 = arith.mulf %109, %113 : vector<16x128xf32>
    %c0_40 = arith.constant 0 : index
    %c0_41 = arith.constant 0 : index
    %115 = vector.load %arg9[%c0_40, %c0_41] : memref<1x128xf32, #tpu.memory_space<vmem>>, vector<1x128xf32>
    %116 = vector.broadcast %115 : vector<1x128xf32> to vector<16x128xf32>
    %117 = arith.mulf %114, %116 : vector<16x128xf32>
    %c0_42 = arith.constant 0 : index
    %c0_43 = arith.constant 0 : index
    %118 = vector.load %arg10[%c0_42, %c0_43] : memref<1x128xf32, #tpu.memory_space<vmem>>, vector<1x128xf32>
    %119 = vector.broadcast %118 : vector<1x128xf32> to vector<16x128xf32>
    %120 = arith.addf %117, %119 : vector<16x128xf32>
    %121 = arith.truncf %120 : vector<16x128xf32> to vector<16x128xbf16>
    %c0_44 = arith.constant 0 : index
    %c0_45 = arith.constant 0 : index
    %122 = vector.load %arg11[%c0_44, %c0_45] : memref<128x256xbf16, #tpu.memory_space<vmem>>, vector<128x256xbf16>
    %cst_46 = arith.constant dense<0.000000e+00> : vector<16x256xf32>
    %123 = tpu.matmul %121, %122, %cst_46 {dimension_numbers = #tpu.dot_dimension_numbers<[1], [0], [0], [1], [0, 0, 1, 1], [], []>} : vector<16x128xbf16>, vector<128x256xbf16>, vector<16x256xf32> -> vector<16x256xf32>
    %c0_47 = arith.constant 0 : index
    %c0_48 = arith.constant 0 : index
    %124 = vector.load %arg12[%c0_47, %c0_48] : memref<1x256xf32, #tpu.memory_space<vmem>>, vector<1x256xf32>
    %125 = vector.broadcast %124 : vector<1x256xf32> to vector<16x256xf32>
    %126 = arith.addf %123, %125 : vector<16x256xf32>
    %cst_49 = arith.constant 0.000000e+00 : f32
    %127 = vector.broadcast %cst_49 : f32 to vector<16x256xf32>
    %128 = arith.maximumf %126, %127 : vector<16x256xf32>
    %129 = arith.truncf %128 : vector<16x256xf32> to vector<16x256xbf16>
    %c0_50 = arith.constant 0 : index
    %c0_51 = arith.constant 0 : index
    %130 = vector.load %arg13[%c0_50, %c0_51] : memref<256x128xbf16, #tpu.memory_space<vmem>>, vector<256x128xbf16>
    %cst_52 = arith.constant dense<0.000000e+00> : vector<16x128xf32>
    %131 = tpu.matmul %129, %130, %cst_52 {dimension_numbers = #tpu.dot_dimension_numbers<[1], [0], [0], [1], [0, 0, 1, 1], [], []>} : vector<16x256xbf16>, vector<256x128xbf16>, vector<16x128xf32> -> vector<16x128xf32>
    %c0_53 = arith.constant 0 : index
    %c0_54 = arith.constant 0 : index
    %132 = vector.load %arg14[%c0_53, %c0_54] : memref<1x128xf32, #tpu.memory_space<vmem>>, vector<1x128xf32>
    %133 = vector.broadcast %132 : vector<1x128xf32> to vector<16x128xf32>
    %134 = arith.addf %131, %133 : vector<16x128xf32>
    %135 = arith.addf %120, %134 : vector<16x128xf32>
    %cst_55 = arith.constant dense<0.000000e+00> : vector<16xf32>
    %136 = vector.multi_reduction <add>, %135, %cst_55 [1] : vector<16x128xf32> to vector<16xf32>
    %137 = vector.shape_cast %136 : vector<16xf32> to vector<16x1xf32>
    %cst_56 = arith.constant 1.280000e+02 : f32
    %138 = vector.broadcast %cst_56 : f32 to vector<16x1xf32>
    %139 = arith.divf %137, %138 : vector<16x1xf32>
    %140 = vector.broadcast %139 : vector<16x1xf32> to vector<16x128xf32>
    %141 = arith.subf %135, %140 : vector<16x128xf32>
    %142 = arith.mulf %141, %141 : vector<16x128xf32>
    %cst_57 = arith.constant dense<0.000000e+00> : vector<16xf32>
    %143 = vector.multi_reduction <add>, %142, %cst_57 [1] : vector<16x128xf32> to vector<16xf32>
    %144 = vector.shape_cast %143 : vector<16xf32> to vector<16x1xf32>
    %cst_58 = arith.constant 1.280000e+02 : f32
    %145 = vector.broadcast %cst_58 : f32 to vector<16x1xf32>
    %146 = arith.divf %144, %145 : vector<16x1xf32>
    %147 = vector.broadcast %139 : vector<16x1xf32> to vector<16x128xf32>
    %148 = arith.subf %135, %147 : vector<16x128xf32>
    %cst_59 = arith.constant 9.99999974E-6 : f32
    %149 = vector.broadcast %cst_59 : f32 to vector<16x1xf32>
    %150 = arith.addf %146, %149 : vector<16x1xf32>
    %151 = math.rsqrt %150 : vector<16x1xf32>
    %152 = vector.broadcast %151 : vector<16x1xf32> to vector<16x128xf32>
    %153 = arith.mulf %148, %152 : vector<16x128xf32>
    %c0_60 = arith.constant 0 : index
    %c0_61 = arith.constant 0 : index
    %154 = vector.load %arg15[%c0_60, %c0_61] : memref<1x128xf32, #tpu.memory_space<vmem>>, vector<1x128xf32>
    %155 = vector.broadcast %154 : vector<1x128xf32> to vector<16x128xf32>
    %156 = arith.mulf %153, %155 : vector<16x128xf32>
    %c0_62 = arith.constant 0 : index
    %c0_63 = arith.constant 0 : index
    %157 = vector.load %arg16[%c0_62, %c0_63] : memref<1x128xf32, #tpu.memory_space<vmem>>, vector<1x128xf32>
    %158 = vector.broadcast %157 : vector<1x128xf32> to vector<16x128xf32>
    %159 = arith.addf %156, %158 : vector<16x128xf32>
    %c0_64 = arith.constant 0 : index
    %c0_65 = arith.constant 0 : index
    %c0_66 = arith.constant 0 : index
    %160 = vector.load %arg17[%c0_64, %c0_65, %c0_66] : memref<1x16x128xf32, #tpu.memory_space<vmem>>, vector<1x16x128xf32>
    %161 = vector.shape_cast %160 : vector<1x16x128xf32> to vector<16x128xf32>
    %162 = vector.shape_cast %159 : vector<16x128xf32> to vector<1x16x128xf32>
    tpu.vector_store %arg17[%c0_64, %c0_65, %c0_66], %162 {strides = array<i32>} : memref<1x16x128xf32, #tpu.memory_space<vmem>>, vector<1x16x128xf32>,
    return
  }
  func.func @transform_0(%arg0: i32) -> (i32, i32, i32) {
    %c0_i32 = arith.constant 0 : i32
    %c0_i32_0 = arith.constant 0 : i32
    %c0_i32_1 = arith.constant 0 : i32
    return %arg0, %c0_i32, %c0_i32_0 : i32, i32, i32
  }
  func.func @transform_1(%arg0: i32) -> (i32, i32, i32) {
    %c0_i32 = arith.constant 0 : i32
    %c0_i32_0 = arith.constant 0 : i32
    %c0_i32_1 = arith.constant 0 : i32
    return %arg0, %c0_i32, %c0_i32_0 : i32, i32, i32
  }
  func.func @transform_2(%arg0: i32) -> (i32, i32) {
    %c0_i32 = arith.constant 0 : i32
    %c0_i32_0 = arith.constant 0 : i32
    %c0_i32_1 = arith.constant 0 : i32
    return %c0_i32, %c0_i32_0 : i32, i32
  }
  func.func @transform_3(%arg0: i32) -> (i32, i32) {
    %c0_i32 = arith.constant 0 : i32
    %c0_i32_0 = arith.constant 0 : i32
    %c0_i32_1 = arith.constant 0 : i32
    return %c0_i32, %c0_i32_0 : i32, i32
  }
  func.func @transform_4(%arg0: i32) -> (i32, i32) {
    %c0_i32 = arith.constant 0 : i32
    %c0_i32_0 = arith.constant 0 : i32
    %c0_i32_1 = arith.constant 0 : i32
    return %c0_i32, %c0_i32_0 : i32, i32
  }
  func.func @transform_5(%arg0: i32) -> (i32, i32) {
    %c0_i32 = arith.constant 0 : i32
    %c0_i32_0 = arith.constant 0 : i32
    %c0_i32_1 = arith.constant 0 : i32
    return %c0_i32, %c0_i32_0 : i32, i32
  }
  func.func @transform_6(%arg0: i32) -> (i32, i32) {
    %c0_i32 = arith.constant 0 : i32
    %c0_i32_0 = arith.constant 0 : i32
    %c0_i32_1 = arith.constant 0 : i32
    return %c0_i32, %c0_i32_0 : i32, i32
  }
  func.func @transform_7(%arg0: i32) -> (i32, i32) {
    %c0_i32 = arith.constant 0 : i32
    %c0_i32_0 = arith.constant 0 : i32
    %c0_i32_1 = arith.constant 0 : i32
    return %c0_i32, %c0_i32_0 : i32, i32
  }
  func.func @transform_8(%arg0: i32) -> (i32, i32) {
    %c0_i32 = arith.constant 0 : i32
    %c0_i32_0 = arith.constant 0 : i32
    %c0_i32_1 = arith.constant 0 : i32
    return %c0_i32, %c0_i32_0 : i32, i32
  }
  func.func @transform_9(%arg0: i32) -> (i32, i32) {
    %c0_i32 = arith.constant 0 : i32
    %c0_i32_0 = arith.constant 0 : i32
    %c0_i32_1 = arith.constant 0 : i32
    return %c0_i32, %c0_i32_0 : i32, i32
  }
  func.func @transform_10(%arg0: i32) -> (i32, i32) {
    %c0_i32 = arith.constant 0 : i32
    %c0_i32_0 = arith.constant 0 : i32
    %c0_i32_1 = arith.constant 0 : i32
    return %c0_i32, %c0_i32_0 : i32, i32
  }
  func.func @transform_11(%arg0: i32) -> (i32, i32) {
    %c0_i32 = arith.constant 0 : i32
    %c0_i32_0 = arith.constant 0 : i32
    %c0_i32_1 = arith.constant 0 : i32
    return %c0_i32, %c0_i32_0 : i32, i32
  }
  func.func @transform_12(%arg0: i32) -> (i32, i32) {
    %c0_i32 = arith.constant 0 : i32
    %c0_i32_0 = arith.constant 0 : i32
    %c0_i32_1 = arith.constant 0 : i32
    return %c0_i32, %c0_i32_0 : i32, i32
  }
  func.func @transform_13(%arg0: i32) -> (i32, i32) {
    %c0_i32 = arith.constant 0 : i32
    %c0_i32_0 = arith.constant 0 : i32
    %c0_i32_1 = arith.constant 0 : i32
    return %c0_i32, %c0_i32_0 : i32, i32
  }
  func.func @transform_14(%arg0: i32) -> (i32, i32) {
    %c0_i32 = arith.constant 0 : i32
    %c0_i32_0 = arith.constant 0 : i32
    %c0_i32_1 = arith.constant 0 : i32
    return %c0_i32, %c0_i32_0 : i32, i32
  }
  func.func @transform_15(%arg0: i32) -> (i32, i32) {
    %c0_i32 = arith.constant 0 : i32
    %c0_i32_0 = arith.constant 0 : i32
    %c0_i32_1 = arith.constant 0 : i32
    return %c0_i32, %c0_i32_0 : i32, i32
  }
  func.func @transform_16(%arg0: i32) -> (i32, i32, i32) {
    %c0_i32 = arith.constant 0 : i32
    %c0_i32_0 = arith.constant 0 : i32
    %c0_i32_1 = arith.constant 0 : i32
    return %arg0, %c0_i32, %c0_i32_0 : i32, i32, i32
  }
}

</mosaic_0001>

<bundles_post_ra>
// kernel: transformer_encoder_layer_fwd.1
= control target key start
LH: loop header
LB: loop body
LE: loop exit
PB: predicated region body
PF: predicated region fallthrough
CT: control target
= control target key end

     0   :  { %s3664_s0 = inlined_call_operand.vmem [shape: f32[2,16,128], index: 0, kind: input, shape index: {}]   ;;  %s3665_s1 = inlined_call_operand.vmem [shape: f32[2,16,128], index: 1, kind: input, shape index: {}]   ;;  %s3666_s2 = inlined_call_operand.vmem [shape: bf16[128,256], index: 2, kind: input, shape index: {}]   ;;  %s3667_s3 = inlined_call_operand.vmem [shape: f32[1,256], index: 3, kind: input, shape index: {}]   ;;  %s3668_s4 = inlined_call_operand.vmem [shape: bf16[128,128], index: 4, kind: input, shape index: {}]   ;;  %s3669_s5 = inlined_call_operand.hbm [shape: f32[1,128], index: 5, kind: input, shape index: {}]   ;;  %s3670_s6 = inlined_call_operand.hbm [shape: bf16[128,128], index: 6, kind: input, shape index: {}]   ;;  %s3671_s7 = inlined_call_operand.hbm [shape: f32[1,128], index: 7, kind: input, shape index: {}]   ;;  %s3672_s8 = inlined_call_operand.hbm [shape: f32[1,128], index: 8, kind: input, shape index: {}]   ;;  %s3673_s9 = inlined_call_operand.hbm [shape: f32[1,128], index: 9, kind: input, shape index: {}]   ;;  %s3674_s10 = inlined_call_operand.hbm [shape: bf16[128,256], index: 10, kind: input, shape index: {}]   ;;  %s3675_s11 = inlined_call_operand.hbm [shape: f32[1,256], index: 11, kind: input, shape index: {}]   ;;  %s3676_s12 = inlined_call_operand.hbm [shape: bf16[256,128], index: 12, kind: input, shape index: {}]   ;;  %s3677_s13 = inlined_call_operand.hbm [shape: f32[1,128], index: 13, kind: input, shape index: {}]   ;;  %s3678_s14 = inlined_call_operand.hbm [shape: f32[1,128], index: 14, kind: input, shape index: {}]   ;;  %s3679_s15 = inlined_call_operand.hbm [shape: f32[1,128], index: 15, kind: input, shape index: {}]   ;;  %s3680_s16 = inlined_call_operand.vmem [shape: f32[2,16,128], index: 16, kind: output, shape index: {}]  }
   0x1   :  { %3686 = sst [smem:[#allocation26_spill]] %s3664_s0 }
   0x2   :  { %3687 = sst [smem:[#allocation27_spill]] %s3665_s1 }
   0x3   :  { %3688 = sst [smem:[#allocation28_spill]] %s3667_s3 }
   0x4   :  { %3689 = sst [smem:[#allocation29_spill]] %s3680_s16 }
   0x5   :  { %21 = vsyncpa [#allocation3], 0 }
   0x6   :  { %22 = vsyncpa [#allocation5], 0 }
   0x7   :  { %23 = vsyncpa [#allocation8], 0 }
   0x8   :  { %24 = vsyncpa [#allocation11], 0 }
   0x9   :  { %25 = vsyncpa [#allocation14], 0 }
   0xa   :  { %26 = vsyncpa [#allocation17], 0  ;;  %s3129_s21 = smov 0  }
   0xb LB: > { %3690 = sst [smem:[#allocation25_spill]] %s3021_s21  ;;  %s3023_s22 = smov [#allocation4]   ;;  %s3021_s21 = sphi %s3129_s21, %s32_s21  }
   0xc   : > { %s441_s23 = sshll.u32 %s3023_s22, 4  ;;  %s3135_s24 = sadd.s32 4294967295, %s3021_s21   ;;  %s3140_s23 = int_to_ptr.vmem [resolvable:$true] %s441_s23 }
   0xd   : > { %p2175_p0 = scmp.ge.s32.totalorder %s3021_s21, 1  ;;  %p409_p1 = scmp.lt.s32.totalorder %s3021_s21, 3 }
   0xe   : > { %p3684_p2 = scmp.eq.s32.totalorder %s3135_s24, 0  ;;  %s3024_s26 = smov [#allocation7]  }
   0xf   : > { %p3142_p3 = pnand %p2175_p0, %p409_p1  ;;  %s466_s27 = sshll.u32 %s3024_s26, 4  ;;  %s3148_s27 = int_to_ptr.vmem [resolvable:$true] %s466_s27 }
  0x10   : > { %s3025_s29 = smov [#allocation10]   ;;  %s2683_s18 = scalar_lea.hbm %s3670_s6, 1024 }
  0x11   : > { %s3691_s25 = scalar_select %p3142_p3, 1, 0 }
  0x12   : > { %p2478_p4 = pneg %p3142_p3  ;;  %s487_s30 = sshll.u32 %s3025_s29, 4  ;;  %s3156_s30 = int_to_ptr.vmem [resolvable:$true] %s487_s30 }
  0x13   : > { %p2684_p6 = scmp.ne.s32.totalorder %s3670_s6, %s2683_s18  ;;  %p2690_p10 = scmp.lt.u32.totalorder %s2683_s18, %s3670_s6 }
  0x14   : > { %p3152_p5 = pnand %p3684_p2, %p2478_p4 }
  0x16   : > { %p3166_p7 = pneg %p3152_p5 }
  0x18   : > { %p2686_p8 = pnand %p3166_p7, %p2684_p6 }
  0x1a   : > { %p2687_p9 = pneg %p2686_p8 }
  0x1c   : > { %p2692_p11 = pnand %p2690_p10, %p2687_p9 }
  0x1e   : > { %2695 = shalt.err (!%p2692_p11)
}
  0x1f   : > { %s2696_s0 = scalar_lea.vmem %s3140_s23, 1024  ;;  %p2704_p1 = scmp.lt.s32.totalorder %s3140_s23, %s3140_s23 }
  0x20   : > { %p2697_p12 = scmp.ne.s32.totalorder %s3140_s23, %s2696_s0  ;;  %p2705_p4 = scmp.lt.s32.totalorder %s2696_s0, %s2696_s0 }
  0x22   : > { %p2699_p13 = pnand %p2697_p12, %p3166_p7  ;;  %p2706_p6 = por %p2705_p4, %p2704_p1 }
  0x24   : > { %p2700_p0 = pneg %p2699_p13 }
  0x26   : > { %p2707_p8 = pnand %p2706_p6, %p2700_p0 }
  0x28   : > { %2710 = shalt.err (!%p2707_p8)
}
  0x29   : > { %s3682_s17 = smov 64   ;;  %s3683_s18 = smov 4  }
  0x2a   : > { %2484 = dma.hbm_to_vmem [thread:$0]  (!%p3152_p5), %s3670_s6, 1024, %s3140_s23, [#allocation5], %s3682_s17, %s3682_s17, %s3683_s18  }
  0x2b   : > { %s2711_s0 = scalar_lea.hbm %s3672_s8, 16 }
  0x2c   : > { %p2712_p9 = scmp.ne.s32.totalorder %s3672_s8, %s2711_s0  ;;  %p2718_p12 = scmp.lt.u32.totalorder %s2711_s0, %s3672_s8 }
  0x2e   : > { %p2714_p10 = pnand %p2712_p9, %p3166_p7 }
  0x30   : > { %p2715_p11 = pneg %p2714_p10 }
  0x32   : > { %p2720_p13 = pnand %p2718_p12, %p2715_p11 }
  0x34   : > { %2723 = shalt.err (!%p2720_p13)
}
  0x35   : > { %s2724_s23 = scalar_lea.vmem %s3148_s27, 16  ;;  %s2731_s16 = scalar_lea.vmem %s3148_s27, 32 }
  0x36   : > { %p2725_p0 = scmp.ne.s32.totalorder %s3148_s27, %s2724_s23  ;;  %p2732_p6 = scmp.lt.s32.totalorder %s3148_s27, %s3148_s27 }
  0x37   : > { %p2733_p8 = scmp.lt.s32.totalorder %s2731_s16, %s2724_s23 }
  0x38   : > { %p2727_p1 = pnand %p2725_p0, %p3166_p7 }
  0x39   : > { %p2734_p9 = por %p2733_p8, %p2732_p6 }
  0x3a   : > { %p2728_p4 = pneg %p2727_p1 }
  0x3c   : > { %p2735_p10 = pnand %p2734_p9, %p2728_p4 }
  0x3e   : > { %2738 = shalt.err (!%p2735_p10)
}
  0x3f   : > { %2490 = dma.hbm_to_vmem [thread:$0]  (!%p3152_p5), %s3672_s8, 16, %s3148_s27, [#allocation8]  }
  0x40   : > { %s2739_s20 = scalar_lea.hbm %s3674_s10, 2048 }
  0x41   : > { %p2740_p11 = scmp.ne.s32.totalorder %s3674_s10, %s2739_s20  ;;  %p2746_p0 = scmp.lt.u32.totalorder %s2739_s20, %s3674_s10 }
  0x43   : > { %p2742_p12 = pnand %p2740_p11, %p3166_p7 }
  0x45   : > { %p2743_p13 = pneg %p2742_p12 }
  0x47   : > { %p2748_p1 = pnand %p2746_p0, %p2743_p13 }
  0x49   : > { %2751 = shalt.err (!%p2748_p1)
}
  0x4a   : > { %s2752_s27 = scalar_lea.vmem %s3156_s30, 2048  ;;  %p2760_p9 = scmp.lt.s32.totalorder %s3156_s30, %s3156_s30 }
  0x4b   : > { %p2753_p4 = scmp.ne.s32.totalorder %s3156_s30, %s2752_s27  ;;  %p2761_p10 = scmp.lt.s32.totalorder %s2752_s27, %s2752_s27 }
  0x4d   : > { %p2755_p6 = pnand %p2753_p4, %p3166_p7  ;;  %p2762_p11 = por %p2761_p10, %p2760_p9 }
  0x4f   : > { %p2756_p8 = pneg %p2755_p6 }
  0x51   : > { %p2763_p12 = pnand %p2762_p11, %p2756_p8 }
  0x53   : > { %2766 = shalt.err (!%p2763_p12)
}
  0x54   : > { %s3028_s16 = smov 128   ;;  %s3029_s1 = smov 8  }
  0x55   : > { %2496 = dma.hbm_to_vmem [thread:$0]  (!%p3152_p5), %s3674_s10, 2048, %s3156_s30, [#allocation11], %s3028_s16, %s3028_s16, %s3029_s1  }
  0x56   : > { %s3030_s19 = smov [#allocation13]   ;;  %s3031_s26 = smov [#allocation16]  }
  0x57   : > { %s511_s20 = sshll.u32 %s3030_s19, 4  ;;  %s536_s29 = sshll.u32 %s3031_s26, 4  ;;  %s512_s20 = int_to_ptr.vmem [resolvable:$true] %s511_s20  ;;  %s3237_s29 = int_to_ptr.vmem [resolvable:$true] %s536_s29 }
  0x58   : > { %s2767_s27 = scalar_lea.hbm %s3676_s12, 2048 }
  0x59   : > { %p2768_p13 = scmp.ne.s32.totalorder %s3676_s12, %s2767_s27  ;;  %p2774_p4 = scmp.lt.u32.totalorder %s2767_s27, %s3676_s12 }
  0x5b   : > { %p2770_p0 = pnand %p2768_p13, %p3166_p7 }
  0x5d   : > { %p2771_p1 = pneg %p2770_p0 }
  0x5f   : > { %p2776_p6 = pnand %p2774_p4, %p2771_p1 }
  0x61   : > { %2779 = shalt.err (!%p2776_p6)
}
  0x62   : > { %s2780_s16 = scalar_lea.vmem %s512_s20, 2048  ;;  %p2788_p11 = scmp.lt.s32.totalorder %s512_s20, %s512_s20 }
  0x63   : > { %p2781_p8 = scmp.ne.s32.totalorder %s512_s20, %s2780_s16  ;;  %p2789_p12 = scmp.lt.s32.totalorder %s2780_s16, %s2780_s16 }
  0x65   : > { %p2783_p9 = pnand %p2781_p8, %p3166_p7  ;;  %p2790_p2 = por %p2789_p12, %p2788_p11 }
  0x67   : > { %p2784_p10 = pneg %p2783_p9 }
  0x69   : > { %p2791_p3 = pnand %p2790_p2, %p2784_p10 }
  0x6b   : > { %2794 = shalt.err (!%p2791_p3)
}
  0x6c   : > { %s3694_s17 = smov 4   ;;  %s3695_s18 = smov 64  }
  0x6d   : > { %2502 = dma.hbm_to_vmem [thread:$0]  (!%p3152_p5), %s3676_s12, 2048, %s512_s20, [#allocation14], %s3695_s18, %s3695_s18, %s3694_s17  }
  0x6e   : > { %s2795_s0 = scalar_lea.hbm %s3678_s14, 16 }
  0x6f   : > { %p2796_p13 = scmp.ne.s32.totalorder %s3678_s14, %s2795_s0  ;;  %p2802_p0 = scmp.lt.u32.totalorder %s2795_s0, %s3678_s14 }
  0x71   : > { %p2798_p2 = pnand %p2796_p13, %p3166_p7 }
  0x73   : > { %p2799_p3 = pneg %p2798_p2 }
  0x75   : > { %p2804_p1 = pnand %p2802_p0, %p2799_p3 }
  0x77   : > { %2807 = shalt.err (!%p2804_p1)
}
  0x78   : > { %s2808_s20 = scalar_lea.vmem %s3237_s29, 16  ;;  %s2815_s16 = scalar_lea.vmem %s3237_s29, 32 }
  0x79   : > { %p2809_p4 = scmp.ne.s32.totalorder %s3237_s29, %s2808_s20  ;;  %p2816_p9 = scmp.lt.s32.totalorder %s3237_s29, %s3237_s29 }
  0x7a   : > { %p2817_p10 = scmp.lt.s32.totalorder %s2815_s16, %s2808_s20 }
  0x7b   : > { %p2811_p6 = pnand %p2809_p4, %p3166_p7 }
  0x7c   : > { %p2818_p11 = por %p2817_p10, %p2816_p9 }
  0x7d   : > { %p2812_p8 = pneg %p2811_p6 }
  0x7f   : > { %p2819_p12 = pnand %p2818_p11, %p2812_p8 }
  0x81   : > { %2822 = shalt.err (!%p2819_p12)
}
  0x82   : > { %2508 = dma.hbm_to_vmem [thread:$0]  (!%p3152_p5), %s3678_s14, 16, %s3237_s29, [#allocation17]  }
  0x83   : > { %s3032_s1 = smov [#allocation2]   ;;  %s3033_s19 = smov [#allocation6]  }
  0x84   : > { %s431_s21 = sshll.u32 %s3032_s1, 4  ;;  %s455_s26 = sshll.u32 %s3033_s19, 4  ;;  %s432_s21 = int_to_ptr.vmem [resolvable:$true] %s431_s21  ;;  %s3284_s26 = int_to_ptr.vmem [resolvable:$true] %s455_s26 }
  0x85   : > { %s2823_s27 = scalar_lea.hbm %s3669_s5, 16 }
  0x86   : > { %p2824_p13 = scmp.ne.s32.totalorder %s3669_s5, %s2823_s27  ;;  %p2830_p0 = scmp.lt.u32.totalorder %s2823_s27, %s3669_s5 }
  0x88   : > { %p2826_p2 = pnand %p2824_p13, %p3166_p7 }
  0x8a   : > { %p2827_p3 = pneg %p2826_p2 }
  0x8c   : > { %p2832_p1 = pnand %p2830_p0, %p2827_p3 }
  0x8e   : > { %2835 = shalt.err (!%p2832_p1)
}
  0x8f   : > { %s2836_s16 = scalar_lea.vmem %s432_s21, 16  ;;  %s2843_s17 = scalar_lea.vmem %s432_s21, 32 }
  0x90   : > { %p2837_p4 = scmp.ne.s32.totalorder %s432_s21, %s2836_s16  ;;  %p2844_p9 = scmp.lt.s32.totalorder %s432_s21, %s432_s21 }
  0x91   : > { %p2845_p10 = scmp.lt.s32.totalorder %s2843_s17, %s2836_s16 }
  0x92   : > { %p2839_p6 = pnand %p2837_p4, %p3166_p7 }
  0x93   : > { %p2846_p11 = por %p2845_p10, %p2844_p9 }
  0x94   : > { %p2840_p8 = pneg %p2839_p6 }
  0x96   : > { %p2847_p12 = pnand %p2846_p11, %p2840_p8 }
  0x98   : > { %2850 = shalt.err (!%p2847_p12)
}
  0x99   : > { %2481 = dma.hbm_to_vmem [thread:$0]  (!%p3152_p5), %s3669_s5, 16, %s432_s21, [#allocation3]  }
  0x9a   : > { %s2851_s23 = scalar_lea.hbm %s3671_s7, 16 }
  0x9b   : > { %p2852_p13 = scmp.ne.s32.totalorder %s3671_s7, %s2851_s23  ;;  %p2858_p0 = scmp.lt.u32.totalorder %s2851_s23, %s3671_s7 }
  0x9d   : > { %p2854_p2 = pnand %p2852_p13, %p3166_p7 }
  0x9f   : > { %p2855_p3 = pneg %p2854_p2 }
  0xa1   : > { %p2860_p1 = pnand %p2858_p0, %p2855_p3 }
  0xa3   : > { %2863 = shalt.err (!%p2860_p1)
}
  0xa4   : > { %s2864_s21 = scalar_lea.vmem %s3284_s26, 16  ;;  %s2871_s29 = scalar_lea.vmem %s3284_s26, 32 }
  0xa5   : > { %p2865_p4 = scmp.ne.s32.totalorder %s3284_s26, %s2864_s21  ;;  %p2872_p9 = scmp.lt.s32.totalorder %s3284_s26, %s3284_s26 }
  0xa6   : > { %p2873_p10 = scmp.lt.s32.totalorder %s2871_s29, %s2864_s21 }
  0xa7   : > { %p2867_p6 = pnand %p2865_p4, %p3166_p7 }
  0xa8   : > { %p2874_p11 = por %p2873_p10, %p2872_p9 }
  0xa9   : > { %p2868_p8 = pneg %p2867_p6 }
  0xab   : > { %p2875_p12 = pnand %p2874_p11, %p2868_p8 }
  0xad   : > { %2878 = shalt.err (!%p2875_p12)
}
  0xae   : > { %2487 = dma.hbm_to_vmem [thread:$0]  (!%p3152_p5), %s3671_s7, 16, %s3284_s26, [#allocation5]  }
  0xaf   : > { %s3034_s18 = smov [#allocation9]   ;;  %s3035_s19 = smov [#allocation12]  }
  0xb0   : > { %s477_s1 = sshll.u32 %s3034_s18, 4  ;;  %s501_s0 = sshll.u32 %s3035_s19, 4  ;;  %s478_s1 = int_to_ptr.vmem [resolvable:$true] %s477_s1  ;;  %s3328_s0 = int_to_ptr.vmem [resolvable:$true] %s501_s0 }
  0xb1   : > { %s2879_s3 = scalar_lea.hbm %s3673_s9, 16 }
  0xb2   : > { %p2880_p13 = scmp.ne.s32.totalorder %s3673_s9, %s2879_s3  ;;  %p2886_p0 = scmp.lt.u32.totalorder %s2879_s3, %s3673_s9 }
  0xb4   : > { %p2882_p2 = pnand %p2880_p13, %p3166_p7 }
  0xb6   : > { %p2883_p3 = pneg %p2882_p2 }
  0xb8   : > { %p2888_p1 = pnand %p2886_p0, %p2883_p3 }
  0xba   : > { %2891 = shalt.err (!%p2888_p1)
}
  0xbb   : > { %s2892_s29 = scalar_lea.vmem %s478_s1, 16  ;;  %s2899_s16 = scalar_lea.vmem %s478_s1, 32 }
  0xbc   : > { %p2893_p4 = scmp.ne.s32.totalorder %s478_s1, %s2892_s29  ;;  %p2900_p9 = scmp.lt.s32.totalorder %s478_s1, %s478_s1 }
  0xbd   : > { %p2901_p10 = scmp.lt.s32.totalorder %s2899_s16, %s2892_s29 }
  0xbe   : > { %p2895_p6 = pnand %p2893_p4, %p3166_p7 }
  0xbf   : > { %p2902_p11 = por %p2901_p10, %p2900_p9 }
  0xc0   : > { %p2896_p8 = pneg %p2895_p6 }
  0xc2   : > { %p2903_p12 = pnand %p2902_p11, %p2896_p8 }
  0xc4   : > { %2906 = shalt.err (!%p2903_p12)
}
  0xc5   : > { %2493 = dma.hbm_to_vmem [thread:$0]  (!%p3152_p5), %s3673_s9, 16, %s478_s1, [#allocation8]  }
  0xc6   : > { %s2907_s27 = scalar_lea.hbm %s3675_s11, 32 }
  0xc7   : > { %p2908_p13 = scmp.ne.s32.totalorder %s3675_s11, %s2907_s27  ;;  %p2914_p0 = scmp.lt.u32.totalorder %s2907_s27, %s3675_s11 }
  0xc9   : > { %p2910_p2 = pnand %p2908_p13, %p3166_p7 }
  0xcb   : > { %p2911_p3 = pneg %p2910_p2 }
  0xcd   : > { %p2916_p1 = pnand %p2914_p0, %p2911_p3 }
  0xcf   : > { %2919 = shalt.err (!%p2916_p1)
}
  0xd0   : > { %s2920_s1 = scalar_lea.vmem %s3328_s0, 32  ;;  %p2928_p9 = scmp.lt.s32.totalorder %s3328_s0, %s3328_s0 }
  0xd1   : > { %p2921_p4 = scmp.ne.s32.totalorder %s3328_s0, %s2920_s1  ;;  %p2929_p10 = scmp.lt.s32.totalorder %s2920_s1, %s2920_s1 }
  0xd3   : > { %p2923_p6 = pnand %p2921_p4, %p3166_p7  ;;  %p2930_p11 = por %p2929_p10, %p2928_p9 }
  0xd5   : > { %p2924_p8 = pneg %p2923_p6 }
  0xd7   : > { %p2931_p12 = pnand %p2930_p11, %p2924_p8 }
  0xd9   : > { %2934 = shalt.err (!%p2931_p12)
}
  0xda   : > { %2499 = dma.hbm_to_vmem [thread:$0]  (!%p3152_p5), %s3675_s11, 32, %s3328_s0, [#allocation11]  }
  0xdb   : > { %s3036_s16 = smov [#allocation15]   ;;  %s3037_s18 = smov [#allocation18]  }
  0xdc   : > { %s525_s17 = sshll.u32 %s3036_s16, 4  ;;  %s547_s19 = sshll.u32 %s3037_s18, 4  ;;  %s526_s17 = int_to_ptr.vmem [resolvable:$true] %s525_s17  ;;  %s3371_s19 = int_to_ptr.vmem [resolvable:$true] %s547_s19 }
  0xdd   : > { %s2935_s3 = scalar_lea.hbm %s3677_s13, 16 }
  0xde   : > { %p2936_p13 = scmp.ne.s32.totalorder %s3677_s13, %s2935_s3  ;;  %p2942_p0 = scmp.lt.u32.totalorder %s2935_s3, %s3677_s13 }
  0xe0   : > { %p2938_p2 = pnand %p2936_p13, %p3166_p7 }
  0xe2   : > { %p2939_p3 = pneg %p2938_p2 }
  0xe4   : > { %p2944_p1 = pnand %p2942_p0, %p2939_p3 }
  0xe6   : > { %2947 = shalt.err (!%p2944_p1)
}
  0xe7   : > { %s2948_s1 = scalar_lea.vmem %s526_s17, 16  ;;  %s2955_s26 = scalar_lea.vmem %s526_s17, 32 }
  0xe8   : > { %p2949_p4 = scmp.ne.s32.totalorder %s526_s17, %s2948_s1  ;;  %p2956_p9 = scmp.lt.s32.totalorder %s526_s17, %s526_s17 }
  0xe9   : > { %p2957_p10 = scmp.lt.s32.totalorder %s2955_s26, %s2948_s1 }
  0xea   : > { %p2951_p6 = pnand %p2949_p4, %p3166_p7 }
  0xeb   : > { %p2958_p11 = por %p2957_p10, %p2956_p9 }
  0xec   : > { %p2952_p8 = pneg %p2951_p6 }
  0xee   : > { %p2959_p12 = pnand %p2958_p11, %p2952_p8 }
  0xf0   : > { %2962 = shalt.err (!%p2959_p12)
}
  0xf1   : > { %2505 = dma.hbm_to_vmem [thread:$0]  (!%p3152_p5), %s3677_s13, 16, %s526_s17, [#allocation14]  }
  0xf2   : > { %s2963_s27 = scalar_lea.hbm %s3679_s15, 16 }
  0xf3   : > { %p2964_p13 = scmp.ne.s32.totalorder %s3679_s15, %s2963_s27  ;;  %p2970_p0 = scmp.lt.u32.totalorder %s2963_s27, %s3679_s15 }
  0xf5   : > { %p2966_p2 = pnand %p2964_p13, %p3166_p7 }
  0xf7   : > { %p2967_p3 = pneg %p2966_p2 }
  0xf9   : > { %p2972_p1 = pnand %p2970_p0, %p2967_p3 }
  0xfb   : > { %2975 = shalt.err (!%p2972_p1)
}
  0xfc   : > { %s2976_s17 = scalar_lea.vmem %s3371_s19, 16  ;;  %s2983_s0 = scalar_lea.vmem %s3371_s19, 32 }
  0xfd   : > { %p2977_p4 = scmp.ne.s32.totalorder %s3371_s19, %s2976_s17  ;;  %p2984_p9 = scmp.lt.s32.totalorder %s3371_s19, %s3371_s19 }
  0xfe   : > { %p2985_p10 = scmp.lt.s32.totalorder %s2983_s0, %s2976_s17 }
  0xff   : > { %p2979_p6 = pnand %p2977_p4, %p3166_p7 }
 0x100   : > { %p2986_p11 = por %p2985_p10, %p2984_p9 }
 0x101   : > { %p2980_p8 = pneg %p2979_p6 }
 0x103   : > { %p2987_p12 = pnand %p2986_p11, %p2980_p8 }
 0x105   : > { %2990 = shalt.err (!%p2987_p12)
}
 0x106   : > { %2511 = dma.hbm_to_vmem [thread:$0]  (!%p3152_p5), %s3679_s15, 16, %s3371_s19, [#allocation17]  }
 0x107   : > { %p3696_p13 = scmp.ne.s32.totalorder %s3691_s25, 0 }
 0x108   : > { %p3697_p7 = scmp.eq.s32.totalorder (!%p3696_p13), %s3135_s24, 0 }
 0x109   : > { %576 = sbr.rel (%p3696_p13) target bundleno = 3271 (0xcc7), region = 84 }
 0x110   : > { %2996 = dma.done.wait (%p3697_p7), [#allocation3], 16   ;;  %p3698_p2 = pmov %p3697_p7 }
 0x112   : > { %2998 = vsyncadd (%p3698_p2), [#allocation3], 4294967280  ;;  %p3699_p3 = pmov %p3698_p2 }
 0x113   : > { %p3700_p0 = pmov %p3698_p2 }
 0x114   : > { %3000 = dma.done.wait (%p3699_p3), [#allocation5], 1040  }
 0x115   : > { %3002 = vsyncadd (%p3700_p0), [#allocation5], 4294966256  ;;  %p3701_p1 = pmov %p3700_p0 }
 0x116   : > { %p3702_p5 = pmov %p3700_p0 }
 0x117   : > { %3004 = dma.done.wait (%p3701_p1), [#allocation8], 32  }
 0x118   : > { %3006 = vsyncadd (%p3702_p5), [#allocation8], 4294967264  ;;  %p3703_p4 = pmov %p3700_p0 }
 0x119   : > { %p3704_p6 = pmov %p3700_p0 }
 0x11a   : > { %3008 = dma.done.wait (%p3703_p4), [#allocation11], 2080  }
 0x11b   : > { %3010 = vsyncadd (%p3704_p6), [#allocation11], 4294965216  ;;  %p3705_p8 = pmov %p3700_p0 }
 0x11c   : > { %p3706_p9 = pmov %p3700_p0 }
 0x11d   : > { %3012 = dma.done.wait (%p3705_p8), [#allocation14], 2064  }
 0x11e   : > { %3014 = vsyncadd (%p3706_p9), [#allocation14], 4294965232  ;;  %p3707_p10 = pmov %p3700_p0 }
 0x11f   : > { %p3708_p11 = pmov %p3700_p0 }
 0x120   : > { %3016 = dma.done.wait (%p3707_p10), [#allocation17], 32  }
 0x121   : > { %3018 = vsyncadd (%p3708_p11), [#allocation17], 4294967264  ;;  %v3038_v0 = vmov 0   ;;  %v3039_v1 = vmov 0.0   ;;  %v2563_v2 = vld [vmem:[%s3666_s2 + $0x4] ss:$8 sps:$4 sm:$0xff]   ;;  %v713_v34 = vlaneseq }
 0x122   : > { %835 = vmatprep.mubr.bf16.mxu0 %v3038_v0  ;;  %2346 = vmatprep.subr.bf16.mxu1 %v3039_v1  ;;  %v2565_v3 = vld [vmem:[%s3666_s2] ss:$8 sps:$4 sm:$0xff]   ;;  %v2566_v4 = vld [vmem:[%s3666_s2 + $0x14] ss:$8 sps:$4 sm:$0xff]   ;;  %v2568_v5 = vld [vmem:[%s3666_s2 + $0x10] ss:$8 sps:$4 sm:$0xff]  }
 0x123   : > { %803 = vmatprep.subr.bf16.mxu0 %v2563_v2  ;;  %v2569_v6 = vld [vmem:[%s3666_s2 + $0x24] ss:$8 sps:$4 sm:$0xff]   ;;  %p671_p12 = scmp.lt.s32.totalorder %s3135_s24, 1  ;;  %v2571_v7 = vld [vmem:[%s3666_s2 + $0x20] ss:$8 sps:$4 sm:$0xff]   ;;  %s3709_s17 = sld [smem:[#allocation26_spill]] }
 0x124   : > { %804 = vmatpush1.bf16.msra.mxu0 %v2565_v3  ;;  %v2572_v8 = vld [vmem:[%s3666_s2 + $0x34] ss:$8 sps:$4 sm:$0xff]   ;;  %v2574_v9 = vld [vmem:[%s3666_s2 + $0x30] ss:$8 sps:$4 sm:$0xff]   ;;  %v2575_v10 = vld [vmem:[%s3666_s2 + $0x44] ss:$8 sps:$4 sm:$0xff]  }
 0x125   : > { %805 = vmatprep.subr.bf16.mxu0 %v2566_v4  ;;  %s3715_s24 = smov (!%p671_p12, %s3135_s24), 1  ;;  %v2587_v11 = vld [vmem:[%s3668_s4] sm:$0xff]   ;;  %v2588_v12 = vld [vmem:[%s3668_s4 + $0x8] sm:$0xff]   ;;  %v2578_v14 = vld [vmem:[%s3666_s2 + $0x54] ss:$8 sps:$4 sm:$0xff]   ;;  %s3710_s25 = sld [smem:[#allocation27_spill]] }
 0x126   : > { %s3475_s19 = sshll.u32 %s3715_s24, 4  ;;  %2347 = vmatpush3.bf16.msra.mxu1 %v2587_v11  ;;  %v2577_v13 = vld [vmem:[%s3666_s2 + $0x40] ss:$8 sps:$4 sm:$0xff]   ;;  %v2580_v15 = vld [vmem:[%s3666_s2 + $0x50] ss:$8 sps:$4 sm:$0xff]   ;;  %vm3040_vm0 = vmmov 0  }
 0x127   : > { %2348 = vmatprep.subr.bf16.mxu1 %v3039_v1  ;;  %v2589_v16 = vld [vmem:[%s3668_s4 + $0x10] sm:$0xff]   ;;  %v2581_v17 = vld [vmem:[%s3666_s2 + $0x64] ss:$8 sps:$4 sm:$0xff]   ;;  %v2590_v18 = vld [vmem:[%s3668_s4 + $0x18] sm:$0xff]   ;;  %2362 = vmatprep.mubr.msk.bf16.mxu1 %vm3040_vm0, %v3039_v1  ;;  %v3550_v35 = vshrl.u32 %v713_v34, 7  ;;  %s3711_s27 = sld [smem:[#allocation28_spill]] }
 0x128   : > { %806 = vmatpush1.bf16.msra.mxu0 %v2568_v5  ;;  %v2583_v19 = vld [vmem:[%s3666_s2 + $0x60] ss:$8 sps:$4 sm:$0xff]   ;;  %v2584_v24 = vld [vmem:[%s3666_s2 + $0x74] ss:$8 sps:$4 sm:$0xff]   ;;  %v2586_v26 = vld [vmem:[%s3666_s2 + $0x70] ss:$8 sps:$4 sm:$0xff]  }
 0x129   : > { %807 = vmatprep.subr.bf16.mxu0 %v2569_v6  ;;  %s675_s0 = scalar_lea.vmem %s3709_s17, %s3475_s19  ;;  %v2591_v25 = vld [vmem:[%s3668_s4 + $0x20] sm:$0xff]   ;;  %v2592_v29 = vld [vmem:[%s3668_s4 + $0x28] sm:$0xff]   ;;  %v2593_v31 = vld [vmem:[%s3668_s4 + $0x30] sm:$0xff]   ;;  %v715_v36 = vsub.s32 0, %v3550_v35  ;;  %v719_v38 = vsub.s32 1, %v3550_v35  ;;  %vm961_vm1 = vcmask 261120  }
 0x12a   : > { %2349 = vmatpush3.bf16.msra.mxu1 %v2588_v12  ;;  %v3511_v20 = vld [vmem:[%s675_s0] sm:$0xff]  ;;  %v3513_v21 = vld [vmem:[%s675_s0 + $0x8] sm:$0xff]  ;;  %v2594_v32 = vld [vmem:[%s3668_s4 + $0x38] sm:$0xff]   ;;  %vm1009_vm2 = vcmask 130048   ;;  %s3041_s3 = smov 96   ;;  %s3042_s24 = smov 32  }
 0x12b   : > { %s680_s28 = scalar_lea.vmem %s3710_s25, %s3475_s19  ;;  %2350 = vmatprep.subr.bf16.mxu1 %v3039_v1  ;;  %v694_v33 = vpack.c.bf16 %v3513_v21, %v3511_v20  ;;  %v2222_v52 = vld [vmem:[#allocation2] ss:$0 sm:$0xff]  ;;  %s3043_s30 = smov 64   ;;  %vm1459_vm3 = vcmask 523264   ;;  %vm1462_vm4 = vcmask 785408  }
 0x12c   : > { %808 = vmatpush1.bf16.msra.mxu0 %v2571_v7  ;;  %v689_v22 = vld [vmem:[%s680_s28] sm:$0xff]  ;;  %v690_v23 = vld [vmem:[%s680_s28 + $0x8] sm:$0xff]  ;;  %s3712_s17 = sld [smem:[#allocation29_spill]] }
 0x12d   : > { %809 = vmatprep.subr.bf16.mxu0 %v2572_v8  ;;  %v691_v27 = vadd.f32 %v689_v22, %v3511_v20  ;;  %v692_v28 = vadd.f32 %v690_v23, %v3513_v21  ;;  %v711_v37 = vld [vmem:[%s3711_s27] sm:$0x3] }
 0x12e   : > { %2351 = vmatpush3.bf16.msra.mxu1 %v2589_v16  ;;  %v716_v39 = vrot.slane %v711_v37, %v715_v36  ;;  %v720_v41 = vrot.slane %v711_v37, %v719_v38 }
 0x12f   : > { %2352 = vmatprep.subr.bf16.mxu1 %v3039_v1  ;;  %v693_v30 = vpack.c.bf16 %v692_v28, %v691_v27 }
 0x130   : > { %810 = vmatpush1.bf16.msra.mxu0 %v2574_v9 }
 0x131   : > { %811 = vmatprep.subr.bf16.mxu0 %v2575_v10 }
 0x132   : > { %2353 = vmatpush3.bf16.msra.mxu1 %v2590_v18  ;;  %s685_s1 = scalar_lea.vmem %s3712_s17, %s3475_s19 }
 0x133   : > { %2354 = vmatprep.subr.bf16.mxu1 %v3039_v1 }
 0x134   : > { %812 = vmatpush1.bf16.msra.mxu0 %v2577_v13 }
 0x135   : > { %813 = vmatprep.subr.bf16.mxu0 %v2578_v14 }
 0x136   : > { %2355 = vmatpush3.bf16.msra.mxu1 %v2591_v25 }
 0x137   : > { %2356 = vmatprep.subr.bf16.mxu1 %v3039_v1 }
 0x138   : > { %814 = vmatpush1.bf16.msra.mxu0 %v2580_v15 }
 0x139   : > { %815 = vmatprep.subr.bf16.mxu0 %v2581_v17 }
 0x13a   : > { %2357 = vmatpush3.bf16.msra.mxu1 %v2592_v29 }
 0x13b   : > { %2358 = vmatprep.subr.bf16.mxu1 %v3039_v1 }
 0x13c   : > { %816 = vmatpush1.bf16.msra.mxu0 %v2583_v19 }
 0x13d   : > { %817 = vmatprep.subr.bf16.mxu0 %v2584_v24 }
 0x13e   : > { %2359 = vmatpush3.bf16.msra.mxu1 %v2593_v31 }
 0x13f   : > { %2360 = vmatprep.subr.bf16.mxu1 %v3039_v1 }
 0x140   : > { %818 = vmatpush1.bf16.msra.mxu0 %v2586_v26 }
 0x141   : > { %2390 = vmatprep.subr.bf16.mxu0 %v3039_v1 }
 0x142   : > { %2361 = vmatpush3.bf16.msra.mxu1 %v2594_v32 }
 0x143   : > { %836 = vmatmul.mubr.bf16.vlgmr.msra.gmra.mrb[0].mxu0 %v693_v30  ;;  %2366 = vmatprep.subr.bf16.mxu1 %v3039_v1 }
 0x144   : > { %2392 = vmatprep.mubr.msk.bf16.mxu0 %vm3040_vm0, %v3039_v1 }
 0x145   : > { %2363 = vmatmul.mubr.bf16.vlgmr.msra.gmra.mrb[0].mxu1 %v694_v33 }
 0x146   : > { %2368 = vmatprep.mubr.msk.bf16.mxu1 %vm3040_vm0, %v3039_v1 }
 0x216   : > { %v837_v40 = vpop.f32.mrb[0].mxu0 }
 0x217   : > { %v839_v42 = vpop.f32.mrb[1].mxu0  ;;  %v838_v44 = vadd.f32 %v837_v40, %v716_v39 }
 0x218   : > { %v841_v43 = vpop.f32.mrb[2].mxu0  ;;  %v840_v47 = vadd.f32 %v839_v42, %v720_v41  ;;  %v951_v53 = vpop.f32.mrb[0].mxu1 }
 0x219   : > { %v842_v45 = vadd.f32 %v841_v43, %v716_v39  ;;  %v843_v46 = vpop.f32.mrb[3].mxu0  ;;  %v952_v54 = vadd.f32 %v2222_v52, %v951_v53  ;;  %v2364_v55 = vpop.f32.mrb[1].mxu1 }
 0x21a   : > { %v844_v48 = vadd.f32 %v843_v46, %v720_v41  ;;  %v954_v56 = vpop.f32.mrb[2].mxu1 }
 0x21b   : > { %v958_v49 = vpack.c.bf16 %v842_v45, %v838_v44  ;;  %v955_v57 = vadd.f32 %v2222_v52, %v954_v56  ;;  %v2365_v58 = vpop.f32.mrb[3].mxu1 }
 0x21c   : > { %v959_v50 = vpack.c.bf16 %v844_v48, %v840_v47 }
 0x21d   : > { %v3566_v59 = vpack.c.bf16 %v955_v57, %v952_v54 }
 0x21e   : > { %v966_v51 = vsel %vm961_vm1, %v959_v50, 0 }
 0x21f   : > { %2367 = vmatpush3.bf16.xpose.msra.mxu1 %v966_v51 }
 0x220   : > { %2372 = vmatprep.subr.bf16.mxu1 %v3039_v1 }
 0x226   : > { %2369 = vmatmul.mubr.msk.bf16.vlgmr.msra.gmra.mrb[4].mxu1 %vm961_vm1, %v958_v49 }
 0x227   : > { %2374 = vmatprep.mubr.msk.bf16.mxu1 %vm3040_vm0, %v3039_v1  ;;  %2373 = vmatpush3.bf16.msra.mxu1 %v3566_v59 }
 0x228   : > { %2378 = vmatprep.subr.bf16.mxu1 %v3039_v1 }
 0x2f9   : > { %v1002_v60 = vpop.f32.mrb[4].mxu1 }
 0x2fa   : > { %v2370_v61 = vpop.f32.mrb[5].mxu1  ;;  %v1010_v62 = vsel %vm1009_vm2, %v1002_v60, -inf }
 0x2fb   : > { %1011 = vmax.xlane.f32.xlu0 %v1010_v62  ;;  %v1005_v63 = vpop.f32.mrb[6].mxu1 }
 0x2fc   : > { %v2371_v2 = vpop.f32.mrb[7].mxu1  ;;  %v1013_v3 = vsel %vm1009_vm2, %v1005_v63, -inf }
 0x2ff   : > { %1014 = vmax.xlane.f32.xlu0 %v1013_v3 }
 0x315   : > { %1082 = vrot.lane.b32.xlu0 %v959_v50, %s3041_s3 }
 0x319   : > { %1327 = vrot.lane.b32.xlu0 %v959_v50, %s3042_s24 }
 0x388   : > { %v1012_v4 = vpop.xlane.xlu0 %1011 }
 0x389   : > { %v1016_v5 = vsub.f32 %v1002_v60, %v1012_v4 }
 0x38b   : > { %v1018_v6 = vmul.f32 1.442695, %v1016_v5 }
 0x38c   : > { %v1015_v7 = vpop.xlane.xlu0 %1014 }
 0x38d   : > { %2643 = vpow2.f32 %v1018_v6  ;;  %v1017_v8 = vsub.f32 %v1005_v63, %v1015_v7 }
 0x38f   : > { %v1020_v9 = vmul.f32 1.442695, %v1017_v8 }
 0x390   : > { %v1083_v17 = vpop.permute.xlu0 %1082 }
 0x391   : > { %2645 = vpow2.f32 %v1020_v9  ;;  %v1088_v28 = vsel %vm961_vm1, %v1083_v17, 0 }
 0x394   : > { %v1328_v26 = vpop.permute.xlu0 %1327 }
 0x395   : > { %v1333_v30 = vsel %vm961_vm1, %v1328_v26, 0 }
 0x397   : > { %v2644_v10 = vpop.eup %2643 }
 0x398   : > { %v1022_v11 = vsel %vm1009_vm2, %v2644_v10, 0.0 }
 0x399   : > { %1023 = vadd.xlane.f32.xlu1 %v1022_v11 }
 0x39b   : > { %v2646_v12 = vpop.eup %2645 }
 0x39c   : > { %v1025_v13 = vsel %vm1009_vm2, %v2646_v12, 0.0 }
 0x39d   : > { %1026 = vadd.xlane.f32.xlu1 %v1025_v13 }
 0x3ae   : > { %1079 = vrot.lane.b32.xlu1 %v958_v49, %s3041_s3 }
 0x3b2   : > { %1205 = vrot.lane.b32.xlu1 %v959_v50, %s3043_s30 }
 0x3b6   : > { %1203 = vrot.lane.b32.xlu1 %v958_v49, %s3043_s30 }
 0x3ba   : > { %1325 = vrot.lane.b32.xlu1 %v958_v49, %s3042_s24 }
 0x426   : > { %v1024_v14 = vpop.xlane.xlu1 %1023 }
 0x427   : > { %2647 = vrcp.f32 %v1024_v14 }
 0x42a   : > { %v1027_v15 = vpop.xlane.xlu1 %1026 }
 0x42b   : > { %2649 = vrcp.f32 %v1027_v15 }
 0x42e   : > { %v1080_v16 = vpop.permute.xlu1 %1079 }
 0x431   : > { %v2648_v19 = vpop.eup %2647 }
 0x432   : > { %v1206_v18 = vpop.permute.xlu1 %1205  ;;  %v1030_v24 = vmul.f32 %v2648_v19, %v2644_v10 }
 0x433   : > { %v1211_v22 = vsel %vm961_vm1, %v1206_v18, 0 }
 0x434   : > { %2391 = vmatpush3.bf16.xpose.msra.mxu0 %v1211_v22 }
 0x435   : > { %v2650_v23 = vpop.eup %2649  ;;  %2402 = vmatprep.subr.bf16.mxu0 %v3039_v1 }
 0x436   : > { %v1031_v25 = vmul.f32 %v2650_v23, %v2646_v12  ;;  %v1204_v29 = vpop.permute.xlu1 %1203 }
 0x438   : > { %v1032_v27 = vpack.c.bf16 %v1031_v25, %v1030_v24 }
 0x43a   : > { %2375 = vmatmul.mubr.msk.bf16.vlgmr.msra.gmra.mrb[8].mxu1 %vm1009_vm2, %v1032_v27  ;;  %v1326_v31 = vpop.permute.xlu1 %1325 }
 0x43b   : > { %2379 = vmatpush3.bf16.xpose.msra.mxu1 %v1088_v28  ;;  %2393 = vmatmul.mubr.msk.bf16.vlgmr.msra.gmra.mrb[4].mxu0 %vm961_vm1, %v1204_v29 }
 0x43c   : > { %2403 = vmatpush3.bf16.xpose.msra.mxu0 %v1333_v30  ;;  %2380 = vmatprep.mubr.msk.bf16.mxu1 %vm3040_vm0, %v3039_v1 }
 0x43d   : > { %2404 = vmatprep.mubr.msk.bf16.mxu0 %vm3040_vm0, %v3039_v1  ;;  %2384 = vmatprep.subr.bf16.mxu1 %v3039_v1 }
 0x43e   : > { %2414 = vmatprep.subr.bf16.mxu0 %v3039_v1 }
 0x442   : > { %2381 = vmatmul.mubr.msk.bf16.vlgmr.msra.gmra.mrb[12].mxu1 %vm961_vm1, %v1080_v16 }
 0x443   : > { %2405 = vmatmul.mubr.msk.bf16.vlgmr.msra.gmra.mrb[8].mxu0 %vm961_vm1, %v1326_v31  ;;  %2386 = vmatprep.mubr.msk.bf16.mxu1 %vm3040_vm0, %v3039_v1 }
 0x444   : > { %2430 = vmatprep.mubr.msk.bf16.mxu0 %vm3040_vm0, %v3039_v1 }
 0x50d   : > { %v3598_v32 = vpop.f32.mrb[8].mxu1 }
 0x50e   : > { %v2376_v33 = vpop.f32.mrb[9].mxu1  ;;  %v1247_v34 = vpop.f32.mrb[4].mxu0 }
 0x50f   : > { %v3600_v37 = vpop.f32.mrb[10].mxu1  ;;  %v2394_v39 = vpop.f32.mrb[5].mxu0  ;;  %v1254_v54 = vsel %vm1009_vm2, %v1247_v34, -inf }
 0x510   : > { %v1077_v40 = vpack.c.bf16 %v3600_v37, %v3598_v32  ;;  %v2377_v41 = vpop.f32.mrb[11].mxu1  ;;  %v1250_v42 = vpop.f32.mrb[6].mxu0  ;;  %v2603_v32 = vld [vmem:[#allocation10] ss:$8 sps:$4 sm:$0xff]   ;;  %v2605_v37 = vld [vmem:[#allocation10 + $0x4] ss:$8 sps:$4 sm:$0xff]  }
 0x511   : > { %v2395_v43 = vpop.f32.mrb[7].mxu0  ;;  %v1257_v56 = vsel %vm1009_vm2, %v1250_v42, -inf }
 0x515   : > { %v1124_v44 = vpop.f32.mrb[12].mxu1 }
 0x516   : > { %v2382_v45 = vpop.f32.mrb[13].mxu1  ;;  %v1369_v46 = vpop.f32.mrb[8].mxu0  ;;  %v1131_v47 = vsel %vm1009_vm2, %v1124_v44, -inf }
 0x517   : > { %v2406_v48 = vpop.f32.mrb[9].mxu0  ;;  %1132 = vmax.xlane.f32.xlu0 %v1131_v47  ;;  %v1127_v49 = vpop.f32.mrb[14].mxu1  ;;  %v1376_v57 = vsel %vm1009_vm2, %v1369_v46, -inf }
 0x518   : > { %v2383_v50 = vpop.f32.mrb[15].mxu1  ;;  %v1372_v51 = vpop.f32.mrb[10].mxu0  ;;  %v1134_v52 = vsel %vm1009_vm2, %v1127_v49, -inf }
 0x519   : > { %v2407_v53 = vpop.f32.mrb[11].mxu0  ;;  %1135 = vmax.xlane.f32.xlu1 %v1134_v52  ;;  %v1379_v55 = vsel %vm1009_vm2, %v1372_v51, -inf }
 0x51b   : > { %1255 = vmax.xlane.f32.xlu0 %v1254_v54 }
 0x51d   : > { %1380 = vmax.xlane.f32.xlu1 %v1379_v55 }
 0x51f   : > { %1258 = vmax.xlane.f32.xlu0 %v1257_v56 }
 0x523   : > { %1377 = vmax.xlane.f32.xlu0 %v1376_v57 }
 0x5a4   : > { %v1133_v58 = vpop.xlane.xlu0 %1132 }
 0x5a5   : > { %v1137_v6 = vsub.f32 %v1124_v44, %v1133_v58  ;;  %v2595_v58 = vld [vmem:[#allocation4] sm:$0xff]  }
 0x5a6   : > { %v1136_v60 = vpop.xlane.xlu1 %1135  ;;  %2415 = vmatpush3.bf16.msra.mxu0 %v2595_v58  ;;  %v2624_v58 = vld [vmem:[#allocation10 + $0x70] ss:$8 sps:$4 sm:$0xff]  }
 0x5a7   : > { %v1138_v7 = vsub.f32 %v1127_v49, %v1136_v60  ;;  %v1139_v12 = vmul.f32 1.442695, %v1137_v6  ;;  %v2596_v60 = vld [vmem:[#allocation4 + $0x8] sm:$0xff]   ;;  %2416 = vmatprep.subr.bf16.mxu0 %v3039_v1  ;;  %v2602_v6 = vld [vmem:[#allocation4 + $0x38] sm:$0xff]  }
 0x5a8   : > { %v1256_v61 = vpop.xlane.xlu0 %1255 }
 0x5a9   : > { %v1260_v62 = vsub.f32 %v1247_v34, %v1256_v61  ;;  %v1141_v13 = vmul.f32 1.442695, %v1138_v7  ;;  %v2597_v61 = vld [vmem:[#allocation4 + $0x10] sm:$0xff]  }
 0x5aa   : > { %v1381_v63 = vpop.xlane.xlu1 %1380  ;;  %2417 = vmatpush3.bf16.msra.mxu0 %v2596_v60  ;;  %v2627_v60 = vld [vmem:[#allocation13 + $0x40] sm:$0xff]  }
 0x5ab   : > { %v1262_v2 = vmul.f32 1.442695, %v1260_v62  ;;  %v1383_v3 = vsub.f32 %v1372_v51, %v1381_v63  ;;  %2418 = vmatprep.subr.bf16.mxu0 %v3039_v1  ;;  %v2598_v62 = vld [vmem:[#allocation4 + $0x18] sm:$0xff]   ;;  %v2599_v63 = vld [vmem:[#allocation4 + $0x20] sm:$0xff]  }
 0x5ac   : > { %v1259_v4 = vpop.xlane.xlu0 %1258 }
 0x5ad   : > { %2651 = vpow2.f32 %v1262_v2  ;;  %v1261_v5 = vsub.f32 %v1250_v42, %v1259_v4  ;;  %v1386_v8 = vmul.f32 1.442695, %v1383_v3  ;;  %v2600_v2 = vld [vmem:[#allocation4 + $0x28] sm:$0xff]   ;;  %v2601_v3 = vld [vmem:[#allocation4 + $0x30] sm:$0xff]  }
 0x5ae   : > { %2419 = vmatpush3.bf16.msra.mxu0 %v2597_v61  ;;  %v2628_v61 = vld [vmem:[#allocation13] sm:$0xff]  }
 0x5af   : > { %v1264_v9 = vmul.f32 1.442695, %v1261_v5  ;;  %2420 = vmatprep.subr.bf16.mxu0 %v3039_v1 }
 0x5b0   : > { %v1378_v10 = vpop.xlane.xlu0 %1377 }
 0x5b1   : > { %2653 = vpow2.f32 %v1264_v9  ;;  %v1382_v11 = vsub.f32 %v1369_v46, %v1378_v10 }
 0x5b2   : > { %2655 = vpow2.f32 %v1386_v8  ;;  %2421 = vmatpush3.bf16.msra.mxu0 %v2598_v62  ;;  %v2629_v62 = vld [vmem:[#allocation13 + $0x48] sm:$0xff]  }
 0x5b3   : > { %v1384_v14 = vmul.f32 1.442695, %v1382_v11  ;;  %2422 = vmatprep.subr.bf16.mxu0 %v3039_v1 }
 0x5b5   : > { %2657 = vpow2.f32 %v1384_v14 }
 0x5b6   : > { %2659 = vpow2.f32 %v1139_v12  ;;  %2423 = vmatpush3.bf16.msra.mxu0 %v2599_v63  ;;  %v2630_v63 = vld [vmem:[#allocation13 + $0x8] sm:$0xff]  }
 0x5b7   : > { %v2652_v15 = vpop.eup %2651  ;;  %2661 = vpow2.f32 %v1141_v13  ;;  %2424 = vmatprep.subr.bf16.mxu0 %v3039_v1 }
 0x5b8   : > { %v1266_v16 = vsel %vm1009_vm2, %v2652_v15, 0.0 }
 0x5b9   : > { %1267 = vadd.xlane.f32.xlu0 %v1266_v16 }
 0x5ba   : > { %2425 = vmatpush3.bf16.msra.mxu0 %v2600_v2  ;;  %v2631_v2 = vld [vmem:[#allocation13 + $0x50] sm:$0xff]  }
 0x5bb   : > { %v2654_v17 = vpop.eup %2653  ;;  %2426 = vmatprep.subr.bf16.mxu0 %v3039_v1 }
 0x5bc   : > { %v1269_v18 = vsel %vm1009_vm2, %v2654_v17, 0.0  ;;  %v2656_v19 = vpop.eup %2655 }
 0x5bd   : > { %1270 = vadd.xlane.f32.xlu1 %v1269_v18  ;;  %v1391_v25 = vsel %vm1009_vm2, %v2656_v19, 0.0 }
 0x5be   : > { %2427 = vmatpush3.bf16.msra.mxu0 %v2601_v3  ;;  %v2633_v3 = vld [vmem:[#allocation13 + $0x58] sm:$0xff]  }
 0x5bf   : > { %v2658_v22 = vpop.eup %2657  ;;  %2428 = vmatprep.subr.bf16.mxu0 %v3039_v1 }
 0x5c0   : > { %v2660_v23 = vpop.eup %2659  ;;  %v1388_v24 = vsel %vm1009_vm2, %v2658_v22, 0.0 }
 0x5c1   : > { %v2662_v26 = vpop.eup %2661  ;;  %1389 = vadd.xlane.f32.xlu0 %v1388_v24  ;;  %1392 = vadd.xlane.f32.xlu1 %v1391_v25  ;;  %v1143_v27 = vsel %vm1009_vm2, %v2660_v23, 0.0 }
 0x5c2   : > { %v1146_v28 = vsel %vm1009_vm2, %v2662_v26, 0.0  ;;  %2429 = vmatpush3.bf16.msra.mxu0 %v2602_v6  ;;  %v2636_v6 = vld [vmem:[#allocation13 + $0x20] sm:$0xff]  }
 0x5c3   : > { %2324 = vmatprep.subr.bf16.mxu0 %v2627_v60 }
 0x5c5   : > { %1144 = vadd.xlane.f32.xlu0 %v1143_v27  ;;  %1147 = vadd.xlane.f32.xlu1 %v1146_v28 }
 0x5d6   : > { %1277 = vrot.lane.b32.xlu1 %v3566_v59, %s3043_s30 }
 0x5da   : > { %1399 = vrot.lane.b32.xlu1 %v3566_v59, %s3042_s24 }
 0x5db   : > { %1155 = vrot.lane.b32.xlu0 %v3566_v59, %s3041_s3 }
 0x646   : > { %v1268_v29 = vpop.xlane.xlu0 %1267 }
 0x64a   : > { %v1271_v30 = vpop.xlane.xlu1 %1270 }
 0x64e   : > { %v1390_v31 = vpop.xlane.xlu0 %1389  ;;  %v1393_v33 = vpop.xlane.xlu1 %1392 }
 0x652   : > { %v1145_v34 = vpop.xlane.xlu0 %1144  ;;  %v1148_v39 = vpop.xlane.xlu1 %1147 }
 0x653   : > { %2663 = vrcp.f32 %v1145_v34 }
 0x654   : > { %2665 = vrcp.f32 %v1148_v39 }
 0x655   : > { %2667 = vrcp.f32 %v1271_v30 }
 0x656   : > { %v1156_v41 = vpop.permute.xlu0 %1155  ;;  %2669 = vrcp.f32 %v1268_v29  ;;  %v1278_v47 = vpop.permute.xlu1 %1277 }
 0x657   : > { %2385 = vmatpush3.bf16.msra.mxu1 %v1156_v41  ;;  %2671 = vrcp.f32 %v1390_v31  ;;  %v2606_v41 = vld [vmem:[#allocation10 + $0x10] ss:$8 sps:$4 sm:$0xff]  }
 0x658   : > { %2396 = vmatprep.subr.bf16.mxu1 %v3039_v1  ;;  %2673 = vrcp.f32 %v1393_v33 }
 0x65a   : > { %v1400_v54 = vpop.permute.xlu1 %1399 }
 0x65d   : > { %v2664_v42 = vpop.eup %2663 }
 0x65e   : > { %v2666_v43 = vpop.eup %2665  ;;  %v1151_v44 = vmul.f32 %v2664_v42, %v2660_v23 }
 0x65f   : > { %v1152_v45 = vmul.f32 %v2666_v43, %v2662_v26  ;;  %v2668_v46 = vpop.eup %2667  ;;  %v2239_v26 = vld [vmem:[#allocation6] ss:$0 sm:$0xff] }
 0x660   : > { %v2670_v48 = vpop.eup %2669  ;;  %v1275_v49 = vmul.f32 %v2668_v46, %v2654_v17 }
 0x661   : > { %v1153_v59 = vpack.c.bf16 %v1152_v45, %v1151_v44  ;;  %v1274_v50 = vmul.f32 %v2670_v48, %v2652_v15  ;;  %v2672_v51 = vpop.eup %2671  ;;  %v2609_v48 = vld [vmem:[#allocation10 + $0x20] ss:$8 sps:$4 sm:$0xff]  }
 0x662   : > { %v2674_v53 = vpop.eup %2673  ;;  %v1396_v55 = vmul.f32 %v2672_v51, %v2658_v22  ;;  %v2617_v51 = vld [vmem:[#allocation10 + $0x44] ss:$8 sps:$4 sm:$0xff]  }
 0x663   : > { %2387 = vmatmul.mubr.msk.bf16.vlgmr.msra.gmra.mrb[16].mxu1 %vm1009_vm2, %v1153_v59  ;;  %v1276_v52 = vpack.c.bf16 %v1275_v49, %v1274_v50  ;;  %v1397_v56 = vmul.f32 %v2674_v53, %v2656_v19  ;;  %v2614_v49 = vld [vmem:[#allocation10 + $0x34] ss:$8 sps:$4 sm:$0xff]   ;;  %v2612_v50 = vld [vmem:[#allocation10 + $0x30] ss:$8 sps:$4 sm:$0xff]  }
 0x664   : > { %2397 = vmatpush3.bf16.msra.mxu1 %v1278_v47  ;;  %2398 = vmatprep.mubr.msk.bf16.mxu1 %vm3040_vm0, %v3039_v1  ;;  %v2611_v47 = vld [vmem:[#allocation10 + $0x24] ss:$8 sps:$4 sm:$0xff]   ;;  %v2620_v53 = vld [vmem:[#allocation10 + $0x54] ss:$8 sps:$4 sm:$0xff]  }
 0x665   : > { %2408 = vmatprep.subr.bf16.mxu1 %v3039_v1  ;;  %v1398_v57 = vpack.c.bf16 %v1397_v56, %v1396_v55  ;;  %v2623_v55 = vld [vmem:[#allocation10 + $0x64] ss:$8 sps:$4 sm:$0xff]   ;;  %v2621_v56 = vld [vmem:[#allocation10 + $0x60] ss:$8 sps:$4 sm:$0xff]  }
 0x66b   : > { %2399 = vmatmul.mubr.msk.bf16.vlgmr.msra.gmra.mrb[20].mxu1 %vm1009_vm2, %v1276_v52  ;;  %v2615_v52 = vld [vmem:[#allocation10 + $0x40] ss:$8 sps:$4 sm:$0xff]  }
 0x66c   : > { %2409 = vmatpush3.bf16.msra.mxu1 %v1400_v54  ;;  %2410 = vmatprep.mubr.msk.bf16.mxu1 %vm3040_vm0, %v3039_v1  ;;  %v2618_v54 = vld [vmem:[#allocation10 + $0x50] ss:$8 sps:$4 sm:$0xff]  }
 0x66d   : > { %1730 = vmatprep.subr.bf16.mxu1 %v2605_v37 }
 0x673   : > { %2411 = vmatmul.mubr.msk.bf16.vlgmr.msra.gmra.mrb[24].mxu1 %vm1009_vm2, %v1398_v57  ;;  %v2626_v57 = vld [vmem:[#allocation10 + $0x74] ss:$8 sps:$4 sm:$0xff]  }
 0x674   : > { %1762 = vmatprep.mubr.bf16.mxu1 %v3038_v0  ;;  %1731 = vmatpush1.bf16.msra.mxu1 %v2603_v32 }
 0x736   : > { %v1195_v0 = vpop.f32.mrb[16].mxu1 }
 0x737   : > { %v2388_v4 = vpop.f32.mrb[17].mxu1 }
 0x738   : > { %v1198_v5 = vpop.f32.mrb[18].mxu1  ;;  %v2634_v4 = vld [vmem:[#allocation13 + $0x18] sm:$0xff]  }
 0x739   : > { %v1202_v7 = vpack.c.bf16 %v1198_v5, %v1195_v0  ;;  %v2389_v8 = vpop.f32.mrb[19].mxu1  ;;  %v2632_v0 = vld [vmem:[#allocation13 + $0x10] sm:$0xff]   ;;  %v2635_v5 = vld [vmem:[#allocation13 + $0x60] sm:$0xff]  }
 0x73b   : > { %1448 = vrot.lane.b32.xlu1 %v1202_v7, %s3042_s24  ;;  %v2637_v7 = vld [vmem:[#allocation13 + $0x68] sm:$0xff]  }
 0x73e   : > { %v1317_v9 = vpop.f32.mrb[20].mxu1 }
 0x73f   : > { %v2400_v10 = vpop.f32.mrb[21].mxu1 }
 0x740   : > { %v1320_v11 = vpop.f32.mrb[22].mxu1 }
 0x741   : > { %v1324_v12 = vpack.c.bf16 %v1320_v11, %v1317_v9  ;;  %v2401_v13 = vpop.f32.mrb[23].mxu1 }
 0x743   : > { %1451 = vrot.lane.b32.xlu0 %v1324_v12, %s3043_s30 }
 0x746   : > { %v1439_v14 = vpop.f32.mrb[24].mxu1 }
 0x747   : > { %v2412_v15 = vpop.f32.mrb[25].mxu1 }
 0x748   : > { %v1442_v16 = vpop.f32.mrb[26].mxu1 }
 0x749   : > { %v1446_v17 = vpack.c.bf16 %v1442_v16, %v1439_v14  ;;  %v2413_v18 = vpop.f32.mrb[27].mxu1  ;;  %v2248_v16 = vld [vmem:[#allocation7] ss:$0 sm:$0xff] }
 0x74b   : > { %1454 = vrot.lane.b32.xlu1 %v1446_v17, %s3041_s3 }
 0x7ad   : > { %v1449_v19 = vpop.permute.xlu1 %1448 }
 0x7ae   : > { %v1458_v22 = vsel %vm961_vm1, %v1077_v40, %v1449_v19  ;;  %v2608_v40 = vld [vmem:[#allocation10 + $0x14] ss:$8 sps:$4 sm:$0xff]  }
 0x7af   : > { %1732 = vmatprep.subr.bf16.mxu1 %v2608_v40 }
 0x7b0   : > { %1733 = vmatpush1.bf16.msra.mxu1 %v2606_v41 }
 0x7b1   : > { %1734 = vmatprep.subr.bf16.mxu1 %v2611_v47 }
 0x7b4   : > { %1735 = vmatpush1.bf16.msra.mxu1 %v2609_v48  ;;  %v2266_v48 = vld [vmem:[#allocation15] ss:$0 sm:$0xff] }
 0x7b5   : > { %v1452_v1 = vpop.permute.xlu0 %1451  ;;  %1736 = vmatprep.subr.bf16.mxu1 %v2614_v49 }
 0x7b6   : > { %v1461_v23 = vsel %vm1459_vm3, %v1458_v22, %v1452_v1  ;;  %v2249_v1 = vld [vmem:[#allocation9] ss:$0 sm:$0xff] }
 0x7b8   : > { %1737 = vmatpush1.bf16.msra.mxu1 %v2612_v50 }
 0x7b9   : > { %1738 = vmatprep.subr.bf16.mxu1 %v2617_v51 }
 0x7bc   : > { %1739 = vmatpush1.bf16.msra.mxu1 %v2615_v52 }
 0x7bd   : > { %v1455_v24 = vpop.permute.xlu1 %1454  ;;  %1740 = vmatprep.subr.bf16.mxu1 %v2620_v53 }
 0x7be   : > { %v1464_v25 = vsel %vm1462_vm4, %v1461_v23, %v1455_v24 }
 0x7bf   : > { %2431 = vmatmul.mubr.bf16.vlgmr.msra.gmra.mrb[12].mxu0 %v1464_v25 }
 0x7c0   : > { %1741 = vmatpush1.bf16.msra.mxu1 %v2618_v54  ;;  %2325 = vmatpush3.bf16.msra.mxu0 %v2628_v61 }
 0x7c1   : > { %1742 = vmatprep.subr.bf16.mxu1 %v2623_v55  ;;  %2326 = vmatprep.subr.bf16.mxu0 %v2629_v62 }
 0x7c4   : > { %1743 = vmatpush1.bf16.msra.mxu1 %v2621_v56  ;;  %2327 = vmatpush3.bf16.msra.mxu0 %v2630_v63 }
 0x7c5   : > { %1744 = vmatprep.subr.bf16.mxu1 %v2626_v57  ;;  %2328 = vmatprep.subr.bf16.mxu0 %v2631_v2 }
 0x7c8   : > { %1745 = vmatpush1.bf16.msra.mxu1 %v2624_v58  ;;  %2329 = vmatpush3.bf16.msra.mxu0 %v2632_v0 }
 0x7c9   : > { %2330 = vmatprep.subr.bf16.mxu0 %v2633_v3 }
 0x7cc   : > { %2331 = vmatpush3.bf16.msra.mxu0 %v2634_v4 }
 0x7cd   : > { %2332 = vmatprep.subr.bf16.mxu0 %v2635_v5 }
 0x7d0   : > { %2333 = vmatpush3.bf16.msra.mxu0 %v2636_v6 }
 0x7d1   : > { %2334 = vmatprep.subr.bf16.mxu0 %v2637_v7 }
 0x892   : > { %v1571_v27 = vpop.f32.mrb[12].mxu0 }
 0x893   : > { %v1572_v28 = vadd.f32 %v2239_v26, %v1571_v27  ;;  %v2432_v29 = vpop.f32.mrb[13].mxu0  ;;  %v2639_v27 = vld [vmem:[#allocation13 + $0x70] sm:$0xff]  }
 0x894   : > { %v1574_v30 = vpop.f32.mrb[14].mxu0  ;;  %v2641_v29 = vld [vmem:[#allocation13 + $0x78] sm:$0xff]  }
 0x895   : > { %v1575_v31 = vadd.f32 %v2239_v26, %v1574_v30  ;;  %v2433_v33 = vpop.f32.mrb[15].mxu0  ;;  %v1578_v34 = vadd.f32 %v1572_v28, %v3511_v20  ;;  %v2638_v26 = vld [vmem:[#allocation13 + $0x28] sm:$0xff]   ;;  %v2640_v28 = vld [vmem:[#allocation13 + $0x30] sm:$0xff]   ;;  %v2642_v30 = vld [vmem:[#allocation13 + $0x38] sm:$0xff]  }
 0x896   : > { %2335 = vmatpush3.bf16.msra.mxu0 %v2638_v26 }
 0x897   : > { %1580 = vadd.xlane.f32.xlu0 %v1578_v34  ;;  %v1579_v39 = vadd.f32 %v1575_v31, %v3513_v21  ;;  %2336 = vmatprep.subr.bf16.mxu0 %v2639_v27  ;;  %v1638_v31 = vld [vmem:[#allocation12] sm:$0x3] }
 0x898   : > { %v1643_v33 = vrot.slane %v1638_v31, %v715_v36 }
 0x899   : > { %1582 = vadd.xlane.f32.xlu1 %v1579_v39 }
 0x89a   : > { %2337 = vmatpush3.bf16.msra.mxu0 %v2640_v28 }
 0x89b   : > { %2338 = vmatprep.subr.bf16.mxu0 %v2641_v29 }
 0x89e   : > { %2339 = vmatpush3.bf16.msra.mxu0 %v2642_v30 }
 0x924   : > { %v1581_v42 = vpop.xlane.xlu0 %1580 }
 0x925   : > { %v1585_v43 = vmul.f32 0.0078125, %v1581_v42 }
 0x926   : > { %v1583_v44 = vpop.xlane.xlu1 %1582 }
 0x927   : > { %v1587_v45 = vsub.f32 %v1578_v34, %v1585_v43  ;;  %v1586_v59 = vmul.f32 0.0078125, %v1583_v44  ;;  %v1647_v34 = vrot.slane %v1638_v31, %v719_v38 }
 0x929   : > { %v3648_v46 = vsub.f32 %v1579_v39, %v1586_v59  ;;  %v1589_v20 = vmul.f32 %v1587_v45, %v1587_v45 }
 0x92b   : > { %1591 = vadd.xlane.f32.xlu0 %v1589_v20  ;;  %v1590_v21 = vmul.f32 %v3648_v46, %v3648_v46 }
 0x92f   : > { %1593 = vadd.xlane.f32.xlu0 %v1590_v21 }
 0x9b8   : > { %v1592_v8 = vpop.xlane.xlu0 %1591 }
 0x9b9   : > { %v1595_v9 = vmul.f32 0.0078125, %v1592_v8 }
 0x9bb   : > { %v1597_v10 = vadd.f32 1e-05, %v1595_v9  ;;  %v2283_v9 = vld [vmem:[#allocation16] ss:$0 sm:$0xff] }
 0x9bc   : > { %v1594_v11 = vpop.xlane.xlu0 %1593 }
 0x9bd   : > { %2675 = vrsqrt.f32 %v1597_v10  ;;  %v1596_v12 = vmul.f32 0.0078125, %v1594_v11 }
 0x9bf   : > { %v1598_v13 = vadd.f32 1e-05, %v1596_v12  ;;  %v2284_v12 = vld [vmem:[#allocation18] ss:$0 sm:$0xff] }
 0x9c1   : > { %2677 = vrsqrt.f32 %v1598_v13 }
 0x9c7   : > { %v2676_v14 = vpop.eup %2675 }
 0x9c8   : > { %v1601_v15 = vmul.f32 %v2676_v14, %v1587_v45 }
 0x9ca   : > { %v1610_v19 = vmul.f32 %v2248_v16, %v1601_v15 }
 0x9cb   : > { %v2678_v17 = vpop.eup %2677 }
 0x9cc   : > { %v1602_v18 = vmul.f32 %v2678_v17, %v3648_v46  ;;  %v1619_v23 = vadd.f32 %v2249_v1, %v1610_v19 }
 0x9ce   : > { %v1611_v22 = vmul.f32 %v2248_v16, %v1602_v18 }
 0x9d0   : > { %v1620_v24 = vadd.f32 %v2249_v1, %v1611_v22 }
 0x9d2   : > { %v1621_v25 = vpack.c.bf16 %v1620_v24, %v1619_v23 }
 0x9d4   : > { %1763 = vmatmul.mubr.bf16.vlgmr.msra.gmra.mrb[28].mxu1 %v1621_v25 }
 0xaa7   : > { %v1764_v39 = vpop.f32.mrb[28].mxu1 }
 0xaa8   : > { %v1765_v32 = vadd.f32 %v1764_v39, %v1643_v33  ;;  %v1766_v37 = vpop.f32.mrb[29].mxu1 }
 0xaa9   : > { %v1767_v40 = vadd.f32 %v1766_v37, %v1647_v34  ;;  %v1768_v41 = vpop.f32.mrb[30].mxu1 }
 0xaaa   : > { %v1769_v42 = vadd.f32 %v1768_v41, %v1643_v33  ;;  %v1770_v43 = vpop.f32.mrb[31].mxu1  ;;  %v1773_v45 = vmax.f32 %v1765_v32, 0.0 }
 0xaab   : > { %v1771_v44 = vadd.f32 %v1770_v43, %v1647_v34  ;;  %v1774_v46 = vmax.f32 %v1767_v40, 0.0 }
 0xaac   : > { %v1775_v59 = vmax.f32 %v1769_v42, 0.0 }
 0xaad   : > { %v1776_v20 = vmax.f32 %v1771_v44, 0.0 }
 0xaae   : > { %v1777_v21 = vpack.c.bf16 %v1775_v59, %v1773_v45 }
 0xaaf   : > { %v1778_v47 = vpack.c.bf16 %v1776_v20, %v1774_v46 }
 0xab1   : > { %1946 = vmatprep.mubr.bf16.mxu0 %v1778_v47 }
 0xab2   : > { %1947 = vmatmul.mubr.bf16.vlgmr.msra.gmra.mrb[16].mxu0 %v1777_v21 }
 0xb85   : > { %v2340_v36 = vpop.f32.mrb[16].mxu0 }
 0xb86   : > { %v2341_v35 = vpop.f32.mrb[17].mxu0 }
 0xb87   : > { %v2342_v38 = vadd.f32 %v2341_v35, %v2340_v36  ;;  %v2343_v49 = vpop.f32.mrb[18].mxu0 }
 0xb88   : > { %v2344_v50 = vpop.f32.mrb[19].mxu0 }
 0xb89   : > { %v1949_v51 = vadd.f32 %v2342_v38, %v2266_v48  ;;  %v2345_v52 = vadd.f32 %v2344_v50, %v2343_v49 }
 0xb8b   : > { %v1952_v53 = vadd.f32 %v2345_v52, %v2266_v48  ;;  %v1955_v54 = vadd.f32 %v1949_v51, %v1619_v23 }
 0xb8d   : > { %1957 = vadd.xlane.f32.xlu0 %v1955_v54  ;;  %v1956_v55 = vadd.f32 %v1952_v53, %v1620_v24 }
 0xb8f   : > { %1959 = vadd.xlane.f32.xlu1 %v1956_v55 }
 0xc1a   : > { %v1958_v56 = vpop.xlane.xlu0 %1957 }
 0xc1b   : > { %v1961_v57 = vmul.f32 0.0078125, %v1958_v56 }
 0xc1c   : > { %v1960_v58 = vpop.xlane.xlu1 %1959 }
 0xc1d   : > { %v1963_v60 = vsub.f32 %v1955_v54, %v1961_v57  ;;  %v1962_v61 = vmul.f32 0.0078125, %v1960_v58 }
 0xc1f   : > { %v1964_v62 = vsub.f32 %v1956_v55, %v1962_v61  ;;  %v1965_v63 = vmul.f32 %v1963_v60, %v1963_v60 }
 0xc21   : > { %1967 = vadd.xlane.f32.xlu0 %v1965_v63  ;;  %v1966_v2 = vmul.f32 %v1964_v62, %v1964_v62 }
 0xc23   : > { %1969 = vadd.xlane.f32.xlu1 %v1966_v2 }
 0xcae   : > { %v1968_v0 = vpop.xlane.xlu0 %1967 }
 0xcaf   : > { %v1971_v3 = vmul.f32 0.0078125, %v1968_v0 }
 0xcb0   : > { %v1970_v4 = vpop.xlane.xlu1 %1969 }
 0xcb1   : > { %v1973_v5 = vadd.f32 1e-05, %v1971_v3  ;;  %v1972_v6 = vmul.f32 0.0078125, %v1970_v4 }
 0xcb3   : > { %2679 = vrsqrt.f32 %v1973_v5  ;;  %v1974_v7 = vadd.f32 1e-05, %v1972_v6 }
 0xcb5   : > { %2681 = vrsqrt.f32 %v1974_v7 }
 0xcbd   : > { %v2680_v8 = vpop.eup %2679 }
 0xcbe   : > { %v1977_v10 = vmul.f32 %v2680_v8, %v1963_v60 }
 0xcbf   : > { %v2682_v11 = vpop.eup %2681 }
 0xcc0   : > { %v1986_v13 = vmul.f32 %v2283_v9, %v1977_v10  ;;  %v1978_v14 = vmul.f32 %v2682_v11, %v1964_v62 }
 0xcc2   : > { %v1995_v15 = vadd.f32 %v2284_v12, %v1986_v13  ;;  %v1987_v16 = vmul.f32 %v2283_v9, %v1978_v14 }
 0xcc4   : > { %1997 = vst [vmem:[%s685_s1] sm:$0xff] %v1995_v15  ;;  %v1996_v17 = vadd.f32 %v2284_v12, %v1987_v16 }
 0xcc6   : > { %1998 = vst [vmem:[%s685_s1 + $0x8] sm:$0xff] %v1996_v17 }
 0xcc7 PF: > { %s3713_s26 = sld [smem:[#allocation25_spill]] }
 0xccd   : > { %s32_s21 = sadd.s32 1, %s3713_s26  }
 0xcce   : > { %p29_p13 = scmp.ge.s32.totalorder %s32_s21, 4  }
 0xcd0   :  { %31 = sbr.rel (!%p29_p13) target bundleno = 11 (0xb), region = 162 }
 0xcd7   :  { %2020 = vsyncpa [#allocation3], 1 }
 0xcd8   :  { %2022 = vsyncpa [#allocation3 + $0x1], 1 }
 0xcd9   :  { %2023 = vsyncpa [#allocation5], 1 }
 0xcda   :  { %2024 = vsyncpa [#allocation8], 1 }
 0xcdb   :  { %2025 = vsyncpa [#allocation11], 1 }
 0xcdc   :  { %2026 = vsyncpa [#allocation14], 1 }
 0xcdd   :  { %2027 = vsyncpa [#allocation17], 1 }

</bundles_post_ra>
